<compile_context>
chip_gen: v6e
topology: v6e:2x2x1
jax: 0.10.0
libtpu: 0.0.40
codegen_flags: <defaults>
</compile_context>

<pallas_src>
import functools

import jax
import jax.numpy as jnp
from jax.experimental import pallas as pl
from jax.experimental.pallas import tpu as pltpu

LN_EPS = 1e-5
PAD_TOKEN_ID = 1  # RoBERTa pad / padding_idx


# ----------------------------------------------------------------------------
# Kernel helpers (traced inside kernels)
# ----------------------------------------------------------------------------
def _layernorm(x, gamma, beta):
    # single pass: var = E[x^2] - mu^2 (two lane reductions, no (x-mu) twice)
    mu = jnp.mean(x, axis=-1, keepdims=True)
    ms = jnp.mean(x * x, axis=-1, keepdims=True)
    var = ms - mu * mu
    return (x - mu) * jax.lax.rsqrt(var + LN_EPS) * gamma + beta


def _gelu(x):
    # TODO(synk): HF RoBERTa uses exact erf-based GELU; tanh approximation is
    # used here because tanh lowers cleanly to the TPU EUP.
    return jax.nn.gelu(x, approximate=True)


# ----------------------------------------------------------------------------
# Fused encoder-layer kernel (one grid step == one batch element)
# ----------------------------------------------------------------------------
def encoder_layer_kernel(x_ref, bias_ref,
                         pre_g_ref, pre_b_ref,
                         wqkv_ref, bqkv_ref,
                         wo_ref, bo_ref, ln1_g_ref, ln1_b_ref,
                         w1_ref, b1_ref, w2_ref, b2_ref,
                         ln2_g_ref, ln2_b_ref,
                         wr_ref, br_ref,
                         o_ref, y_ref, *, num_heads, apply_pre_ln):
    x = x_ref[0]                                     # (S, H) f32
    S, H = x.shape
    dh = H // num_heads
    scale = 1.0 / (dh ** 0.5)

    if apply_pre_ln:                                 # embedding LayerNorm fused in
        x = _layernorm(x, pre_g_ref[...], pre_b_ref[...])

    # ---- fused QKV projection (bf16 MXU operands, f32 accumulation) ----
    xb = x.astype(jnp.bfloat16)
    qkv = jnp.dot(xb, wqkv_ref[...],
                  preferred_element_type=jnp.float32) + bqkv_ref[...]   # (S, 3H) f32

    q = qkv[:, :H] * scale                           # fold 1/sqrt(dh) into q
    k = qkv[:, H:2 * H]
    v = qkv[:, 2 * H:]

    # (S, H) -> (NH, S, dh): batch the heads into a single MXU contraction
    def to_heads(t):
        return jnp.swapaxes(t.reshape(S, num_heads, dh), 0, 1)

    qh = to_heads(q).astype(jnp.bfloat16)
    kh = to_heads(k).astype(jnp.bfloat16)
    vh = to_heads(v).astype(jnp.bfloat16)

    s = jnp.einsum('hqd,hkd->hqk', qh, kh,
                   preferred_element_type=jnp.float32)                  # (NH, S, S) f32
    s = s + bias_ref[...]                            # (1,1,S) additive mask, f32

    # softmax in f32; reciprocal on EUP instead of VPU divide
    m = jnp.max(s, axis=-1, keepdims=True)
    p = jnp.exp(s - m)
    denom = jnp.sum(p, axis=-1, keepdims=True)
    p = p * pl.reciprocal(denom, approx=True)

    ctx = jnp.einsum('hqk,hkd->hqd', p.astype(jnp.bfloat16), vh,
                     preferred_element_type=jnp.float32)                # (NH, S, dh)
    ctx = jnp.swapaxes(ctx, 0, 1).reshape(S, H)

    attn = jnp.dot(ctx.astype(jnp.bfloat16), wo_ref[...],
                   preferred_element_type=jnp.float32) + bo_ref[...]
    h1 = _layernorm(x + attn, ln1_g_ref[...], ln1_b_ref[...])

    # ---- FFN ----
    ff = jnp.dot(h1.astype(jnp.bfloat16), w1_ref[...],
                 preferred_element_type=jnp.float32) + b1_ref[...]
    ff = _gelu(ff)
    ff = jnp.dot(ff.astype(jnp.bfloat16), w2_ref[...],
                 preferred_element_type=jnp.float32) + b2_ref[...]

    out = _layernorm(h1 + ff, ln2_g_ref[...], ln2_b_ref[...])           # (S, H) f32
    o_ref[0] = out

    # ---- fused epilogue: mean over sequence + Linear(H, 1) as VPU reduction ----
    pooled = jnp.mean(out, axis=0, keepdims=True)                       # (1, H)
    y = jnp.sum(pooled * wr_ref[...], axis=-1, keepdims=True) + br_ref[...]
    y_ref[...] = y.reshape(1, 1, 1)


# ----------------------------------------------------------------------------
# pallas_call wrapper: grid over batch, weights VMEM-resident across the grid
# ----------------------------------------------------------------------------
def encoder_layer(x, bias, pre_g, pre_b, lp, wr, br, *, num_heads, apply_pre_ln):
    B, S, H = x.shape

    kern = functools.partial(encoder_layer_kernel, num_heads=num_heads,
                             apply_pre_ln=apply_pre_ln)

    def full(a):
        # full-extent block, constant block index -> stays resident in VMEM
        return pl.BlockSpec(a.shape, lambda b: (0,) * a.ndim)

    in_specs = [
        pl.BlockSpec((1, S, H), lambda b: (b, 0, 0)),   # activation tile
        pl.BlockSpec((1, 1, S), lambda b: (b, 0, 0)),   # additive attention bias
        full(pre_g), full(pre_b),
        full(lp['wqkv']), full(lp['bqkv']),
        full(lp['wo']), full(lp['bo']), full(lp['ln1_g']), full(lp['ln1_b']),
        full(lp['w1']), full(lp['b1']), full(lp['w2']), full(lp['b2']),
        full(lp['ln2_g']), full(lp['ln2_b']),
        full(wr), full(br),
    ]
    out_specs = (
        pl.BlockSpec((1, S, H), lambda b: (b, 0, 0)),
        pl.BlockSpec((1, 1, 1), lambda b: (b, 0, 0)),
    )
    out_shape = (
        jax.ShapeDtypeStruct((B, S, H), jnp.float32),
        jax.ShapeDtypeStruct((B, 1, 1), jnp.float32),
    )

    h, y = pl.pallas_call(
        kern,
        grid=(B,),
        in_specs=in_specs,
        out_specs=out_specs,
        out_shape=out_shape,
        compiler_params=pltpu.CompilerParams(
            dimension_semantics=("parallel",),          # megacore on v7x
            vmem_limit_bytes=48 * 1024 * 1024,          # < 64 MiB physical on v7x
        ),
    )(x, bias, pre_g, pre_b,
      lp['wqkv'], lp['bqkv'], lp['wo'], lp['bo'], lp['ln1_g'], lp['ln1_b'],
      lp['w1'], lp['b1'], lp['w2'], lp['b2'], lp['ln2_g'], lp['ln2_b'],
      wr, br)
    return h, y.reshape(B, 1)


# ----------------------------------------------------------------------------
# Parameter init (deterministic, synthetic — no checkpoint)
# ----------------------------------------------------------------------------
def init_params(key, *, vocab, max_pos, hidden, num_heads, inter, n_layers):
    keys = iter(jax.random.split(key, 8 + 8 * n_layers))

    def nrm(shape):
        return 0.02 * jax.random.normal(next(keys), shape, jnp.float32)

    params = {
        'num_heads': num_heads,
        'word_emb': nrm((vocab, hidden)),
        'pos_emb': nrm((max_pos, hidden)),
        'tok_emb': nrm((1, hidden)),
        'emb_ln_g': jnp.ones((1, hidden), jnp.float32),
        'emb_ln_b': jnp.zeros((1, hidden), jnp.float32),
        'wr': nrm((1, hidden)),                       # regressor weight as (1,H) row
        'br': jnp.zeros((1, 1), jnp.float32),
        'layers': [],
    }
    for _ in range(n_layers):
        lp = {
            # fused QKV weight, stored bf16 (MXU input format); f32 accumulation
            'wqkv': jnp.concatenate(
                [nrm((hidden, hidden)), nrm((hidden, hidden)),
                 nrm((hidden, hidden))], axis=1).astype(jnp.bfloat16),
            'bqkv': jnp.zeros((1, 3 * hidden), jnp.float32),
            'wo': nrm((hidden, hidden)).astype(jnp.bfloat16),
            'bo': jnp.zeros((1, hidden), jnp.float32),
            'ln1_g': jnp.ones((1, hidden), jnp.float32),
            'ln1_b': jnp.zeros((1, hidden), jnp.float32),
            'w1': nrm((hidden, inter)).astype(jnp.bfloat16),
            'b1': jnp.zeros((1, inter), jnp.float32),
            'w2': nrm((inter, hidden)).astype(jnp.bfloat16),
            'b2': jnp.zeros((1, hidden), jnp.float32),
            'ln2_g': jnp.ones((1, hidden), jnp.float32),
            'ln2_b': jnp.zeros((1, hidden), jnp.float32),
        }
        params['layers'].append(lp)
    return params


# ----------------------------------------------------------------------------
# Forward pass: RoBERTa encoder -> mean over seq (dim=1) -> Linear(H, 1)
# ----------------------------------------------------------------------------
def roberta_regressor(params, input_ids, attention_mask):
    mask_f = attention_mask.astype(jnp.float32)

    # --- embeddings (data-dependent gathers stay in JAX glue) ---
    position_ids = jnp.cumsum(attention_mask, axis=1) * attention_mask + PAD_TOKEN_ID
    we = jnp.take(params['word_emb'], input_ids, axis=0)           # (B, S, H)
    pe = jnp.take(params['pos_emb'], position_ids, axis=0)         # (B, S, H)
    te = params['tok_emb'][0][None, None, :]                       # token_type 0
    h = we + pe + te                                               # (B, S, H) f32

    # additive attention bias (0 for tokens, large negative for padding), f32
    bias = ((1.0 - mask_f) * (-1e9))[:, None, :]                   # (B, 1, S)

    y = None
    for li, lp in enumerate(params['layers']):
        h, y = encoder_layer(
            h, bias, params['emb_ln_g'], params['emb_ln_b'], lp,
            params['wr'], params['br'],
            num_heads=params['num_heads'],
            apply_pre_ln=(li == 0),          # embedding LayerNorm fused into layer 0
        )
    # pooled = last_hidden_state.mean(dim=1); out = regressor(pooled)
    # (computed inside the last layer's epilogue)
    return y                                                        # (B, 1)


if __name__ == "__main__":
    B, S, H, NH, I, L = 2, 8, 32, 4, 64, 2
    VOCAB, MAX_POS = 50, 40

    key = jax.random.PRNGKey(0)
    k_param, k_ids = jax.random.split(key)

    params = init_params(k_param, vocab=VOCAB, max_pos=MAX_POS, hidden=H,
                         num_heads=NH, inter=I, n_layers=L)

    attention_mask = jnp.array([[1] * S, [1] * (S - 2) + [0, 0]], dtype=jnp.int32)
    input_ids = jax.random.randint(k_ids, (B, S), 2, VOCAB, dtype=jnp.int32)
    input_ids = jnp.where(attention_mask == 1, input_ids, PAD_TOKEN_ID)

    out = roberta_regressor(params, input_ids, attention_mask)
    out = jax.block_until_ready(out)
    assert out.shape == (B, 1) and out.dtype == jnp.float32
    print("KERNEL_OK")
</pallas_src>

<mosaic_0001>
module attributes {stable_mosaic.version = 11 : i64} {
  func.func @encoder_layer_kernel(%arg0: i32, %arg1: memref<1x8x32xf32, #tpu.memory_space<vmem>>, %arg2: memref<1x1x8xf32, #tpu.memory_space<vmem>>, %arg3: memref<1x32xf32, #tpu.memory_space<vmem>>, %arg4: memref<1x32xf32, #tpu.memory_space<vmem>>, %arg5: memref<32x96xbf16, #tpu.memory_space<vmem>>, %arg6: memref<1x96xf32, #tpu.memory_space<vmem>>, %arg7: memref<32x32xbf16, #tpu.memory_space<vmem>>, %arg8: memref<1x32xf32, #tpu.memory_space<vmem>>, %arg9: memref<1x32xf32, #tpu.memory_space<vmem>>, %arg10: memref<1x32xf32, #tpu.memory_space<vmem>>, %arg11: memref<32x64xbf16, #tpu.memory_space<vmem>>, %arg12: memref<1x64xf32, #tpu.memory_space<vmem>>, %arg13: memref<64x32xbf16, #tpu.memory_space<vmem>>, %arg14: memref<1x32xf32, #tpu.memory_space<vmem>>, %arg15: memref<1x32xf32, #tpu.memory_space<vmem>>, %arg16: memref<1x32xf32, #tpu.memory_space<vmem>>, %arg17: memref<1x32xf32, #tpu.memory_space<vmem>>, %arg18: memref<1x1xf32, #tpu.memory_space<vmem>>, %arg19: memref<1x8x32xf32, #tpu.memory_space<vmem>>, %arg20: memref<1x1x1xf32, #tpu.memory_space<vmem>>) attributes {dimension_semantics = [#tpu.dimension_semantics<parallel>], iteration_bounds = array<i64: 2>, scalar_prefetch = 0 : i64, scratch_operands = 0 : i64, tpu.core_type = #tpu.core_type<tc>, window_params = [{transform_indices = @transform_0, window_bounds = array<i64: 1, 8, 32>}, {transform_indices = @transform_1, window_bounds = array<i64: 1, 1, 8>}, {pipeline_mode = #tpu.pipeline_mode<synchronous>, transform_indices = @transform_2, window_bounds = array<i64: 1, 32>}, {pipeline_mode = #tpu.pipeline_mode<synchronous>, transform_indices = @transform_3, window_bounds = array<i64: 1, 32>}, {pipeline_mode = #tpu.pipeline_mode<synchronous>, transform_indices = @transform_4, window_bounds = array<i64: 32, 96>}, {pipeline_mode = #tpu.pipeline_mode<synchronous>, transform_indices = @transform_5, window_bounds = array<i64: 1, 96>}, {pipeline_mode = #tpu.pipeline_mode<synchronous>, transform_indices = @transform_6, window_bounds = array<i64: 32, 32>}, {pipeline_mode = #tpu.pipeline_mode<synchronous>, transform_indices = @transform_7, window_bounds = array<i64: 1, 32>}, {pipeline_mode = #tpu.pipeline_mode<synchronous>, transform_indices = @transform_8, window_bounds = array<i64: 1, 32>}, {pipeline_mode = #tpu.pipeline_mode<synchronous>, transform_indices = @transform_9, window_bounds = array<i64: 1, 32>}, {pipeline_mode = #tpu.pipeline_mode<synchronous>, transform_indices = @transform_10, window_bounds = array<i64: 32, 64>}, {pipeline_mode = #tpu.pipeline_mode<synchronous>, transform_indices = @transform_11, window_bounds = array<i64: 1, 64>}, {pipeline_mode = #tpu.pipeline_mode<synchronous>, transform_indices = @transform_12, window_bounds = array<i64: 64, 32>}, {pipeline_mode = #tpu.pipeline_mode<synchronous>, transform_indices = @transform_13, window_bounds = array<i64: 1, 32>}, {pipeline_mode = #tpu.pipeline_mode<synchronous>, transform_indices = @transform_14, window_bounds = array<i64: 1, 32>}, {pipeline_mode = #tpu.pipeline_mode<synchronous>, transform_indices = @transform_15, window_bounds = array<i64: 1, 32>}, {pipeline_mode = #tpu.pipeline_mode<synchronous>, transform_indices = @transform_16, window_bounds = array<i64: 1, 32>}, {pipeline_mode = #tpu.pipeline_mode<synchronous>, transform_indices = @transform_17, window_bounds = array<i64: 1, 1>}, {transform_indices = @transform_18, window_bounds = array<i64: 1, 8, 32>}, {transform_indices = @transform_19, window_bounds = array<i64: 1, 1, 1>}]} {
    %c0 = arith.constant 0 : index
    %c0_0 = arith.constant 0 : index
    %c0_1 = arith.constant 0 : index
    %0 = vector.load %arg1[%c0, %c0_0, %c0_1] : memref<1x8x32xf32, #tpu.memory_space<vmem>>, vector<1x8x32xf32>
    %1 = vector.shape_cast %0 : vector<1x8x32xf32> to vector<8x32xf32>
    %c0_2 = arith.constant 0 : index
    %c0_3 = arith.constant 0 : index
    %2 = vector.load %arg3[%c0_2, %c0_3] : memref<1x32xf32, #tpu.memory_space<vmem>>, vector<1x32xf32>
    %c0_4 = arith.constant 0 : index
    %c0_5 = arith.constant 0 : index
    %3 = vector.load %arg4[%c0_4, %c0_5] : memref<1x32xf32, #tpu.memory_space<vmem>>, vector<1x32xf32>
    %cst = arith.constant dense<0.000000e+00> : vector<8xf32>
    %4 = vector.multi_reduction <add>, %1, %cst [1] : vector<8x32xf32> to vector<8xf32>
    %5 = vector.shape_cast %4 : vector<8xf32> to vector<8x1xf32>
    %cst_6 = arith.constant 3.200000e+01 : f32
    %6 = vector.broadcast %cst_6 : f32 to vector<8x1xf32>
    %7 = arith.divf %5, %6 : vector<8x1xf32>
    %8 = arith.mulf %1, %1 : vector<8x32xf32>
    %cst_7 = arith.constant dense<0.000000e+00> : vector<8xf32>
    %9 = vector.multi_reduction <add>, %8, %cst_7 [1] : vector<8x32xf32> to vector<8xf32>
    %10 = vector.shape_cast %9 : vector<8xf32> to vector<8x1xf32>
    %cst_8 = arith.constant 3.200000e+01 : f32
    %11 = vector.broadcast %cst_8 : f32 to vector<8x1xf32>
    %12 = arith.divf %10, %11 : vector<8x1xf32>
    %13 = arith.mulf %7, %7 : vector<8x1xf32>
    %14 = arith.subf %12, %13 : vector<8x1xf32>
    %15 = vector.broadcast %7 : vector<8x1xf32> to vector<8x32xf32>
    %16 = arith.subf %1, %15 : vector<8x32xf32>
    %cst_9 = arith.constant 9.99999974E-6 : f32
    %17 = vector.broadcast %cst_9 : f32 to vector<8x1xf32>
    %18 = arith.addf %14, %17 : vector<8x1xf32>
    %19 = math.rsqrt %18 : vector<8x1xf32>
    %20 = vector.broadcast %19 : vector<8x1xf32> to vector<8x32xf32>
    %21 = arith.mulf %16, %20 : vector<8x32xf32>
    %22 = vector.broadcast %2 : vector<1x32xf32> to vector<8x32xf32>
    %23 = arith.mulf %21, %22 : vector<8x32xf32>
    %24 = vector.broadcast %3 : vector<1x32xf32> to vector<8x32xf32>
    %25 = arith.addf %23, %24 : vector<8x32xf32>
    %26 = arith.truncf %25 : vector<8x32xf32> to vector<8x32xbf16>
    %c0_10 = arith.constant 0 : index
    %c0_11 = arith.constant 0 : index
    %27 = vector.load %arg5[%c0_10, %c0_11] : memref<32x96xbf16, #tpu.memory_space<vmem>>, vector<32x96xbf16>
    %cst_12 = arith.constant dense<0.000000e+00> : vector<8x96xf32>
    %28 = tpu.matmul %26, %27, %cst_12 {dimension_numbers = #tpu.dot_dimension_numbers<[1], [0], [0], [1], [0, 0, 1, 1], [], []>} : vector<8x32xbf16>, vector<32x96xbf16>, vector<8x96xf32> -> vector<8x96xf32>
    %c0_13 = arith.constant 0 : index
    %c0_14 = arith.constant 0 : index
    %29 = vector.load %arg6[%c0_13, %c0_14] : memref<1x96xf32, #tpu.memory_space<vmem>>, vector<1x96xf32>
    %30 = vector.broadcast %29 : vector<1x96xf32> to vector<8x96xf32>
    %31 = arith.addf %28, %30 : vector<8x96xf32>
    %32 = vector.extract_strided_slice %31 {offsets = [0, 0], sizes = [8, 32], strides = [1, 1]} : vector<8x96xf32> to vector<8x32xf32>
    %cst_15 = arith.constant 0.353553385 : f32
    %33 = vector.broadcast %cst_15 : f32 to vector<8x32xf32>
    %34 = arith.mulf %32, %33 : vector<8x32xf32>
    %35 = vector.extract_strided_slice %31 {offsets = [0, 32], sizes = [8, 32], strides = [1, 1]} : vector<8x96xf32> to vector<8x32xf32>
    %36 = vector.extract_strided_slice %31 {offsets = [0, 64], sizes = [8, 32], strides = [1, 1]} : vector<8x96xf32> to vector<8x32xf32>
    %37 = vector.shape_cast %34 : vector<8x32xf32> to vector<8x4x8xf32>
    %38 = tpu.transpose %37, [1, 0, 2] : vector<8x4x8xf32> -> vector<4x8x8xf32>
    %39 = arith.truncf %38 : vector<4x8x8xf32> to vector<4x8x8xbf16>
    %40 = vector.shape_cast %35 : vector<8x32xf32> to vector<8x4x8xf32>
    %41 = tpu.transpose %40, [1, 0, 2] : vector<8x4x8xf32> -> vector<4x8x8xf32>
    %42 = arith.truncf %41 : vector<4x8x8xf32> to vector<4x8x8xbf16>
    %43 = vector.shape_cast %36 : vector<8x32xf32> to vector<8x4x8xf32>
    %44 = tpu.transpose %43, [1, 0, 2] : vector<8x4x8xf32> -> vector<4x8x8xf32>
    %45 = arith.truncf %44 : vector<4x8x8xf32> to vector<4x8x8xbf16>
    "tpu.trace_start"() <{level = 10 : i32, message = "hqd,hkd->hqk"}> : () -> ()
    %cst_16 = arith.constant dense<0.000000e+00> : vector<4x8x8xf32>
    %46 = tpu.matmul %39, %42, %cst_16 {dimension_numbers = #tpu.dot_dimension_numbers<[2], [2], [1], [1], [0, 0, 0, 1, 1, 1], [0], [0]>} : vector<4x8x8xbf16>, vector<4x8x8xbf16>, vector<4x8x8xf32> -> vector<4x8x8xf32>
    "tpu.trace_stop"() : () -> ()
    %c0_17 = arith.constant 0 : index
    %c0_18 = arith.constant 0 : index
    %c0_19 = arith.constant 0 : index
    %47 = vector.load %arg2[%c0_17, %c0_18, %c0_19] : memref<1x1x8xf32, #tpu.memory_space<vmem>>, vector<1x1x8xf32>
    %48 = vector.broadcast %47 : vector<1x1x8xf32> to vector<4x8x8xf32>
    %49 = arith.addf %46, %48 : vector<4x8x8xf32>
    %cst_20 = arith.constant dense<0xFF800000> : vector<4x8xf32>
    %50 = vector.multi_reduction <maximumf>, %49, %cst_20 [2] : vector<4x8x8xf32> to vector<4x8xf32>
    %51 = vector.shape_cast %50 : vector<4x8xf32> to vector<4x8x1xf32>
    %52 = vector.broadcast %51 : vector<4x8x1xf32> to vector<4x8x8xf32>
    %53 = arith.subf %49, %52 : vector<4x8x8xf32>
    %54 = math.exp %53 : vector<4x8x8xf32>
    %cst_21 = arith.constant dense<0.000000e+00> : vector<4x8xf32>
    %55 = vector.multi_reduction <add>, %54, %cst_21 [2] : vector<4x8x8xf32> to vector<4x8xf32>
    %56 = vector.shape_cast %55 : vector<4x8xf32> to vector<4x8x1xf32>
    %57 = tpu.reciprocal %56 {approx = true} : vector<4x8x1xf32> -> vector<4x8x1xf32>
    %58 = vector.broadcast %57 : vector<4x8x1xf32> to vector<4x8x8xf32>
    %59 = arith.mulf %54, %58 : vector<4x8x8xf32>
    %60 = arith.truncf %59 : vector<4x8x8xf32> to vector<4x8x8xbf16>
    "tpu.trace_start"() <{level = 10 : i32, message = "hqk,hkd->hqd"}> : () -> ()
    %cst_22 = arith.constant dense<0.000000e+00> : vector<4x8x8xf32>
    %61 = tpu.matmul %60, %45, %cst_22 {dimension_numbers = #tpu.dot_dimension_numbers<[2], [1], [1], [2], [0, 0, 0, 1, 1, 2], [0], [0]>} : vector<4x8x8xbf16>, vector<4x8x8xbf16>, vector<4x8x8xf32> -> vector<4x8x8xf32>
    "tpu.trace_stop"() : () -> ()
    %62 = tpu.transpose %61, [1, 0, 2] : vector<4x8x8xf32> -> vector<8x4x8xf32>
    %63 = vector.shape_cast %62 : vector<8x4x8xf32> to vector<8x32xf32>
    %64 = arith.truncf %63 : vector<8x32xf32> to vector<8x32xbf16>
    %c0_23 = arith.constant 0 : index
    %c0_24 = arith.constant 0 : index
    %65 = vector.load %arg7[%c0_23, %c0_24] : memref<32x32xbf16, #tpu.memory_space<vmem>>, vector<32x32xbf16>
    %cst_25 = arith.constant dense<0.000000e+00> : vector<8x32xf32>
    %66 = tpu.matmul %64, %65, %cst_25 {dimension_numbers = #tpu.dot_dimension_numbers<[1], [0], [0], [1], [0, 0, 1, 1], [], []>} : vector<8x32xbf16>, vector<32x32xbf16>, vector<8x32xf32> -> vector<8x32xf32>
    %c0_26 = arith.constant 0 : index
    %c0_27 = arith.constant 0 : index
    %67 = vector.load %arg8[%c0_26, %c0_27] : memref<1x32xf32, #tpu.memory_space<vmem>>, vector<1x32xf32>
    %68 = vector.broadcast %67 : vector<1x32xf32> to vector<8x32xf32>
    %69 = arith.addf %66, %68 : vector<8x32xf32>
    %70 = arith.addf %25, %69 : vector<8x32xf32>
    %c0_28 = arith.constant 0 : index
    %c0_29 = arith.constant 0 : index
    %71 = vector.load %arg9[%c0_28, %c0_29] : memref<1x32xf32, #tpu.memory_space<vmem>>, vector<1x32xf32>
    %c0_30 = arith.constant 0 : index
    %c0_31 = arith.constant 0 : index
    %72 = vector.load %arg10[%c0_30, %c0_31] : memref<1x32xf32, #tpu.memory_space<vmem>>, vector<1x32xf32>
    %cst_32 = arith.constant dense<0.000000e+00> : vector<8xf32>
    %73 = vector.multi_reduction <add>, %70, %cst_32 [1] : vector<8x32xf32> to vector<8xf32>
    %74 = vector.shape_cast %73 : vector<8xf32> to vector<8x1xf32>
    %cst_33 = arith.constant 3.200000e+01 : f32
    %75 = vector.broadcast %cst_33 : f32 to vector<8x1xf32>
    %76 = arith.divf %74, %75 : vector<8x1xf32>
    %77 = arith.mulf %70, %70 : vector<8x32xf32>
    %cst_34 = arith.constant dense<0.000000e+00> : vector<8xf32>
    %78 = vector.multi_reduction <add>, %77, %cst_34 [1] : vector<8x32xf32> to vector<8xf32>
    %79 = vector.shape_cast %78 : vector<8xf32> to vector<8x1xf32>
    %cst_35 = arith.constant 3.200000e+01 : f32
    %80 = vector.broadcast %cst_35 : f32 to vector<8x1xf32>
    %81 = arith.divf %79, %80 : vector<8x1xf32>
    %82 = arith.mulf %76, %76 : vector<8x1xf32>
    %83 = arith.subf %81, %82 : vector<8x1xf32>
    %84 = vector.broadcast %76 : vector<8x1xf32> to vector<8x32xf32>
    %85 = arith.subf %70, %84 : vector<8x32xf32>
    %cst_36 = arith.constant 9.99999974E-6 : f32
    %86 = vector.broadcast %cst_36 : f32 to vector<8x1xf32>
    %87 = arith.addf %83, %86 : vector<8x1xf32>
    %88 = math.rsqrt %87 : vector<8x1xf32>
    %89 = vector.broadcast %88 : vector<8x1xf32> to vector<8x32xf32>
    %90 = arith.mulf %85, %89 : vector<8x32xf32>
    %91 = vector.broadcast %71 : vector<1x32xf32> to vector<8x32xf32>
    %92 = arith.mulf %90, %91 : vector<8x32xf32>
    %93 = vector.broadcast %72 : vector<1x32xf32> to vector<8x32xf32>
    %94 = arith.addf %92, %93 : vector<8x32xf32>
    %95 = arith.truncf %94 : vector<8x32xf32> to vector<8x32xbf16>
    %c0_37 = arith.constant 0 : index
    %c0_38 = arith.constant 0 : index
    %96 = vector.load %arg11[%c0_37, %c0_38] : memref<32x64xbf16, #tpu.memory_space<vmem>>, vector<32x64xbf16>
    %cst_39 = arith.constant dense<0.000000e+00> : vector<8x64xf32>
    %97 = tpu.matmul %95, %96, %cst_39 {dimension_numbers = #tpu.dot_dimension_numbers<[1], [0], [0], [1], [0, 0, 1, 1], [], []>} : vector<8x32xbf16>, vector<32x64xbf16>, vector<8x64xf32> -> vector<8x64xf32>
    %c0_40 = arith.constant 0 : index
    %c0_41 = arith.constant 0 : index
    %98 = vector.load %arg12[%c0_40, %c0_41] : memref<1x64xf32, #tpu.memory_space<vmem>>, vector<1x64xf32>
    %99 = vector.broadcast %98 : vector<1x64xf32> to vector<8x64xf32>
    %100 = arith.addf %97, %99 : vector<8x64xf32>
    %101 = arith.mulf %100, %100 : vector<8x64xf32>
    %102 = arith.mulf %100, %101 : vector<8x64xf32>
    %cst_42 = arith.constant 4.471500e-02 : f32
    %103 = vector.broadcast %cst_42 : f32 to vector<8x64xf32>
    %104 = arith.mulf %103, %102 : vector<8x64xf32>
    %105 = arith.addf %100, %104 : vector<8x64xf32>
    %cst_43 = arith.constant 0.797884583 : f32
    %106 = vector.broadcast %cst_43 : f32 to vector<8x64xf32>
    %107 = arith.mulf %106, %105 : vector<8x64xf32>
    %108 = math.tanh %107 : vector<8x64xf32>
    %cst_44 = arith.constant 1.000000e+00 : f32
    %109 = vector.broadcast %cst_44 : f32 to vector<8x64xf32>
    %110 = arith.addf %109, %108 : vector<8x64xf32>
    %cst_45 = arith.constant 5.000000e-01 : f32
    %111 = vector.broadcast %cst_45 : f32 to vector<8x64xf32>
    %112 = arith.mulf %111, %110 : vector<8x64xf32>
    %113 = arith.mulf %100, %112 : vector<8x64xf32>
    %114 = arith.truncf %113 : vector<8x64xf32> to vector<8x64xbf16>
    %c0_46 = arith.constant 0 : index
    %c0_47 = arith.constant 0 : index
    %115 = vector.load %arg13[%c0_46, %c0_47] : memref<64x32xbf16, #tpu.memory_space<vmem>>, vector<64x32xbf16>
    %cst_48 = arith.constant dense<0.000000e+00> : vector<8x32xf32>
    %116 = tpu.matmul %114, %115, %cst_48 {dimension_numbers = #tpu.dot_dimension_numbers<[1], [0], [0], [1], [0, 0, 1, 1], [], []>} : vector<8x64xbf16>, vector<64x32xbf16>, vector<8x32xf32> -> vector<8x32xf32>
    %c0_49 = arith.constant 0 : index
    %c0_50 = arith.constant 0 : index
    %117 = vector.load %arg14[%c0_49, %c0_50] : memref<1x32xf32, #tpu.memory_space<vmem>>, vector<1x32xf32>
    %118 = vector.broadcast %117 : vector<1x32xf32> to vector<8x32xf32>
    %119 = arith.addf %116, %118 : vector<8x32xf32>
    %120 = arith.addf %94, %119 : vector<8x32xf32>
    %c0_51 = arith.constant 0 : index
    %c0_52 = arith.constant 0 : index
    %121 = vector.load %arg15[%c0_51, %c0_52] : memref<1x32xf32, #tpu.memory_space<vmem>>, vector<1x32xf32>
    %c0_53 = arith.constant 0 : index
    %c0_54 = arith.constant 0 : index
    %122 = vector.load %arg16[%c0_53, %c0_54] : memref<1x32xf32, #tpu.memory_space<vmem>>, vector<1x32xf32>
    %cst_55 = arith.constant dense<0.000000e+00> : vector<8xf32>
    %123 = vector.multi_reduction <add>, %120, %cst_55 [1] : vector<8x32xf32> to vector<8xf32>
    %124 = vector.shape_cast %123 : vector<8xf32> to vector<8x1xf32>
    %cst_56 = arith.constant 3.200000e+01 : f32
    %125 = vector.broadcast %cst_56 : f32 to vector<8x1xf32>
    %126 = arith.divf %124, %125 : vector<8x1xf32>
    %127 = arith.mulf %120, %120 : vector<8x32xf32>
    %cst_57 = arith.constant dense<0.000000e+00> : vector<8xf32>
    %128 = vector.multi_reduction <add>, %127, %cst_57 [1] : vector<8x32xf32> to vector<8xf32>
    %129 = vector.shape_cast %128 : vector<8xf32> to vector<8x1xf32>
    %cst_58 = arith.constant 3.200000e+01 : f32
    %130 = vector.broadcast %cst_58 : f32 to vector<8x1xf32>
    %131 = arith.divf %129, %130 : vector<8x1xf32>
    %132 = arith.mulf %126, %126 : vector<8x1xf32>
    %133 = arith.subf %131, %132 : vector<8x1xf32>
    %134 = vector.broadcast %126 : vector<8x1xf32> to vector<8x32xf32>
    %135 = arith.subf %120, %134 : vector<8x32xf32>
    %cst_59 = arith.constant 9.99999974E-6 : f32
    %136 = vector.broadcast %cst_59 : f32 to vector<8x1xf32>
    %137 = arith.addf %133, %136 : vector<8x1xf32>
    %138 = math.rsqrt %137 : vector<8x1xf32>
    %139 = vector.broadcast %138 : vector<8x1xf32> to vector<8x32xf32>
    %140 = arith.mulf %135, %139 : vector<8x32xf32>
    %141 = vector.broadcast %121 : vector<1x32xf32> to vector<8x32xf32>
    %142 = arith.mulf %140, %141 : vector<8x32xf32>
    %143 = vector.broadcast %122 : vector<1x32xf32> to vector<8x32xf32>
    %144 = arith.addf %142, %143 : vector<8x32xf32>
    %c0_60 = arith.constant 0 : index
    %c0_61 = arith.constant 0 : index
    %c0_62 = arith.constant 0 : index
    %145 = vector.load %arg19[%c0_60, %c0_61, %c0_62] : memref<1x8x32xf32, #tpu.memory_space<vmem>>, vector<1x8x32xf32>
    %146 = vector.shape_cast %145 : vector<1x8x32xf32> to vector<8x32xf32>
    %147 = vector.shape_cast %144 : vector<8x32xf32> to vector<1x8x32xf32>
    tpu.vector_store %arg19[%c0_60, %c0_61, %c0_62], %147 {strides = array<i32>} : memref<1x8x32xf32, #tpu.memory_space<vmem>>, vector<1x8x32xf32>,
    %cst_63 = arith.constant dense<0.000000e+00> : vector<32xf32>
    %148 = vector.multi_reduction <add>, %144, %cst_63 [0] : vector<8x32xf32> to vector<32xf32>
    %149 = vector.shape_cast %148 : vector<32xf32> to vector<1x32xf32>
    %cst_64 = arith.constant 8.000000e+00 : f32
    %150 = vector.broadcast %cst_64 : f32 to vector<1x32xf32>
    %151 = arith.divf %149, %150 : vector<1x32xf32>
    %c0_65 = arith.constant 0 : index
    %c0_66 = arith.constant 0 : index
    %152 = vector.load %arg17[%c0_65, %c0_66] : memref<1x32xf32, #tpu.memory_space<vmem>>, vector<1x32xf32>
    %153 = arith.mulf %151, %152 : vector<1x32xf32>
    %cst_67 = arith.constant dense<0.000000e+00> : vector<1xf32>
    %154 = vector.multi_reduction <add>, %153, %cst_67 [1] : vector<1x32xf32> to vector<1xf32>
    %155 = vector.shape_cast %154 : vector<1xf32> to vector<1x1xf32>
    %c0_68 = arith.constant 0 : index
    %c0_69 = arith.constant 0 : index
    %156 = vector.load %arg18[%c0_68, %c0_69] : memref<1x1xf32, #tpu.memory_space<vmem>>, vector<1x1xf32>
    %157 = arith.addf %155, %156 : vector<1x1xf32>
    %158 = vector.shape_cast %157 : vector<1x1xf32> to vector<1x1x1xf32>
    %c0_70 = arith.constant 0 : index
    %c0_71 = arith.constant 0 : index
    %c0_72 = arith.constant 0 : index
    %159 = vector.load %arg20[%c0_70, %c0_71, %c0_72] : memref<1x1x1xf32, #tpu.memory_space<vmem>>, vector<1x1x1xf32>
    tpu.vector_store %arg20[%c0_70, %c0_71, %c0_72], %158 {strides = array<i32>} : memref<1x1x1xf32, #tpu.memory_space<vmem>>, vector<1x1x1xf32>,
    return
  }
  func.func @transform_0(%arg0: i32) -> (i32, i32, i32) {
    %c0_i32 = arith.constant 0 : i32
    %c0_i32_0 = arith.constant 0 : i32
    %c0_i32_1 = arith.constant 0 : i32
    return %arg0, %c0_i32, %c0_i32_0 : i32, i32, i32
  }
  func.func @transform_1(%arg0: i32) -> (i32, i32, i32) {
    %c0_i32 = arith.constant 0 : i32
    %c0_i32_0 = arith.constant 0 : i32
    %c0_i32_1 = arith.constant 0 : i32
    return %arg0, %c0_i32, %c0_i32_0 : i32, i32, i32
  }
  func.func @transform_2(%arg0: i32) -> (i32, i32) {
    %c0_i32 = arith.constant 0 : i32
    %c0_i32_0 = arith.constant 0 : i32
    %c0_i32_1 = arith.constant 0 : i32
    return %c0_i32, %c0_i32_0 : i32, i32
  }
  func.func @transform_3(%arg0: i32) -> (i32, i32) {
    %c0_i32 = arith.constant 0 : i32
    %c0_i32_0 = arith.constant 0 : i32
    %c0_i32_1 = arith.constant 0 : i32
    return %c0_i32, %c0_i32_0 : i32, i32
  }
  func.func @transform_4(%arg0: i32) -> (i32, i32) {
    %c0_i32 = arith.constant 0 : i32
    %c0_i32_0 = arith.constant 0 : i32
    %c0_i32_1 = arith.constant 0 : i32
    return %c0_i32, %c0_i32_0 : i32, i32
  }
  func.func @transform_5(%arg0: i32) -> (i32, i32) {
    %c0_i32 = arith.constant 0 : i32
    %c0_i32_0 = arith.constant 0 : i32
    %c0_i32_1 = arith.constant 0 : i32
    return %c0_i32, %c0_i32_0 : i32, i32
  }
  func.func @transform_6(%arg0: i32) -> (i32, i32) {
    %c0_i32 = arith.constant 0 : i32
    %c0_i32_0 = arith.constant 0 : i32
    %c0_i32_1 = arith.constant 0 : i32
    return %c0_i32, %c0_i32_0 : i32, i32
  }
  func.func @transform_7(%arg0: i32) -> (i32, i32) {
    %c0_i32 = arith.constant 0 : i32
    %c0_i32_0 = arith.constant 0 : i32
    %c0_i32_1 = arith.constant 0 : i32
    return %c0_i32, %c0_i32_0 : i32, i32
  }
  func.func @transform_8(%arg0: i32) -> (i32, i32) {
    %c0_i32 = arith.constant 0 : i32
    %c0_i32_0 = arith.constant 0 : i32
    %c0_i32_1 = arith.constant 0 : i32
    return %c0_i32, %c0_i32_0 : i32, i32
  }
  func.func @transform_9(%arg0: i32) -> (i32, i32) {
    %c0_i32 = arith.constant 0 : i32
    %c0_i32_0 = arith.constant 0 : i32
    %c0_i32_1 = arith.constant 0 : i32
    return %c0_i32, %c0_i32_0 : i32, i32
  }
  func.func @transform_10(%arg0: i32) -> (i32, i32) {
    %c0_i32 = arith.constant 0 : i32
    %c0_i32_0 = arith.constant 0 : i32
    %c0_i32_1 = arith.constant 0 : i32
    return %c0_i32, %c0_i32_0 : i32, i32
  }
  func.func @transform_11(%arg0: i32) -> (i32, i32) {
    %c0_i32 = arith.constant 0 : i32
    %c0_i32_0 = arith.constant 0 : i32
    %c0_i32_1 = arith.constant 0 : i32
    return %c0_i32, %c0_i32_0 : i32, i32
  }
  func.func @transform_12(%arg0: i32) -> (i32, i32) {
    %c0_i32 = arith.constant 0 : i32
    %c0_i32_0 = arith.constant 0 : i32
    %c0_i32_1 = arith.constant 0 : i32
    return %c0_i32, %c0_i32_0 : i32, i32
  }
  func.func @transform_13(%arg0: i32) -> (i32, i32) {
    %c0_i32 = arith.constant 0 : i32
    %c0_i32_0 = arith.constant 0 : i32
    %c0_i32_1 = arith.constant 0 : i32
    return %c0_i32, %c0_i32_0 : i32, i32
  }
  func.func @transform_14(%arg0: i32) -> (i32, i32) {
    %c0_i32 = arith.constant 0 : i32
    %c0_i32_0 = arith.constant 0 : i32
    %c0_i32_1 = arith.constant 0 : i32
    return %c0_i32, %c0_i32_0 : i32, i32
  }
  func.func @transform_15(%arg0: i32) -> (i32, i32) {
    %c0_i32 = arith.constant 0 : i32
    %c0_i32_0 = arith.constant 0 : i32
    %c0_i32_1 = arith.constant 0 : i32
    return %c0_i32, %c0_i32_0 : i32, i32
  }
  func.func @transform_16(%arg0: i32) -> (i32, i32) {
    %c0_i32 = arith.constant 0 : i32
    %c0_i32_0 = arith.constant 0 : i32
    %c0_i32_1 = arith.constant 0 : i32
    return %c0_i32, %c0_i32_0 : i32, i32
  }
  func.func @transform_17(%arg0: i32) -> (i32, i32) {
    %c0_i32 = arith.constant 0 : i32
    %c0_i32_0 = arith.constant 0 : i32
    %c0_i32_1 = arith.constant 0 : i32
    return %c0_i32, %c0_i32_0 : i32, i32
  }
  func.func @transform_18(%arg0: i32) -> (i32, i32, i32) {
    %c0_i32 = arith.constant 0 : i32
    %c0_i32_0 = arith.constant 0 : i32
    %c0_i32_1 = arith.constant 0 : i32
    return %arg0, %c0_i32, %c0_i32_0 : i32, i32, i32
  }
  func.func @transform_19(%arg0: i32) -> (i32, i32, i32) {
    %c0_i32 = arith.constant 0 : i32
    %c0_i32_0 = arith.constant 0 : i32
    %c0_i32_1 = arith.constant 0 : i32
    return %arg0, %c0_i32, %c0_i32_0 : i32, i32, i32
  }
}

</mosaic_0001>

<bundles_post_ra>
// kernel: tpu_custom_call.1
= control target key start
LH: loop header
LB: loop body
LE: loop exit
PB: predicated region body
PF: predicated region fallthrough
CT: control target
= control target key end

     0   :  { %s3472_s0 = inlined_call_operand.vmem [shape: f32[2,8,32], index: 0, kind: input, shape index: {}]   ;;  %s3473_s1 = inlined_call_operand.hbm [shape: f32[2,1,8], index: 1, kind: input, shape index: {}]   ;;  %s3474_s2 = inlined_call_operand.hbm [shape: f32[1,32], index: 2, kind: input, shape index: {}]   ;;  %s3475_s3 = inlined_call_operand.hbm [shape: f32[1,32], index: 3, kind: input, shape index: {}]   ;;  %s3476_s4 = inlined_call_operand.vmem [shape: bf16[32,96], index: 4, kind: input, shape index: {}]   ;;  %s3477_s5 = inlined_call_operand.hbm [shape: f32[1,96], index: 5, kind: input, shape index: {}]   ;;  %s3478_s6 = inlined_call_operand.vmem [shape: bf16[32,32], index: 6, kind: input, shape index: {}]   ;;  %s3479_s7 = inlined_call_operand.hbm [shape: f32[1,32], index: 7, kind: input, shape index: {}]   ;;  %s3480_s8 = inlined_call_operand.hbm [shape: f32[1,32], index: 8, kind: input, shape index: {}]   ;;  %s3481_s9 = inlined_call_operand.vmem [shape: f32[1,32], index: 9, kind: input, shape index: {}]   ;;  %s3482_s10 = inlined_call_operand.vmem [shape: bf16[32,64], index: 10, kind: input, shape index: {}]   ;;  %s3483_s11 = inlined_call_operand.vmem [shape: f32[1,64], index: 11, kind: input, shape index: {}]   ;;  %s3484_s12 = inlined_call_operand.vmem [shape: bf16[64,32], index: 12, kind: input, shape index: {}]   ;;  %s3485_s13 = inlined_call_operand.vmem [shape: f32[1,32], index: 13, kind: input, shape index: {}]   ;;  %s3486_s14 = inlined_call_operand.vmem [shape: f32[1,32], index: 14, kind: input, shape index: {}]   ;;  %s3487_s15 = inlined_call_operand.vmem [shape: f32[1,32], index: 15, kind: input, shape index: {}]   ;;  %s3488_s16 = inlined_call_operand.vmem [shape: f32[1,32], index: 16, kind: input, shape index: {}]   ;;  %s3489_s17 = inlined_call_operand.<no memory space> [shape: f32[1,1], index: 17, kind: input, shape index: {}]   ;;  %s3490_s18 = inlined_call_operand.hbm [shape: f32[2,8,32], index: 18, kind: output, shape index: {0}]   ;;  %s3491_s19 = inlined_call_operand.vmem [shape: f32[2,1,1], index: 19, kind: output, shape index: {1}]  }
   0x1   :  { %3503 = sst [smem:[#allocation25_spill]] %s3472_s0  ;;  %v25_v0 = vstv %s3489_s17 }
   0x2   :  { %3504 = sst [smem:[#allocation26_spill]] %s3473_s1  ;;  %26 = vst [vmem:[#allocation2] sm:$0x1] %v25_v0 }
   0x3   :  { %3505 = sst [smem:[#allocation27_spill]] %s3474_s2 }
   0x4   :  { %3506 = sst [smem:[#allocation28_spill]] %s3475_s3 }
   0x5   :  { %3507 = sst [smem:[#allocation29_spill]] %s3477_s5 }
   0x6   :  { %3508 = sst [smem:[#allocation30_spill]] %s3479_s7 }
   0x7   :  { %3509 = sst [smem:[#allocation31_spill]] %s3480_s8 }
   0x8   :  { %3510 = sst [smem:[#allocation32_spill]] %s3490_s18 }
   0x9   :  { %3511 = sst [smem:[#allocation33_spill]] %s3491_s19 }
   0xa   :  { %27 = vsyncpa [#allocation4], 0 }
   0xb   :  { %29 = vsyncpa [#allocation4 + $0x1], 0 }
   0xc   :  { %30 = vsyncpa [#allocation7], 0 }
   0xd   :  { %31 = vsyncpa [#allocation10], 0 }
   0xe   :  { %32 = vsyncpa [#allocation13], 0 }
   0xf   :  { %33 = vsyncpa [#allocation5], 0 }
  0x10   :  { %35 = vsyncpa [#allocation5 + $0x1], 0  ;;  %s3002_s20 = smov 0   ;;  %s3004_s21 = smov 0  }
  0x11   :  { %s3006_s1 = smov 0   ;;  %s3008_s22 = smov 0  }
  0x12 LB: > { %3512 = sst [smem:[#allocation20_spill]] %s2874_s1  ;;  %s2880_s17 = smov [#allocation6]   ;;  %s2878_s22 = sphi %s3008_s22, %s3547_s22   ;;  %s2874_s1 = sphi %s3006_s1, %s3549_s1   ;;  %s2870_s21 = sphi %s3004_s21, %s3551_s21   ;;  %s2866_s20 = sphi %s3002_s20, %s3550_s20  }
  0x13   : > { %3513 = sst [smem:[#allocation21_spill]] %s2878_s22  ;;  %s499_s2 = sshll.u32 %s2880_s17, 4  ;;  %s500_s2 = int_to_ptr.vmem [resolvable:$true] %s499_s2 }
  0x14   : > { %s3023_s23 = sadd.s32 4294967295, %s2878_s22   ;;  %p2326_p0 = scmp.ge.s32.totalorder %s2878_s22, 1 }
  0x15   : > { %p3494_p1 = scmp.eq.s32.totalorder %s3023_s23, 0  ;;  %p486_p2 = scmp.lt.s32.totalorder %s2878_s22, 3 }
  0x16   : > { %s2881_s25 = smov [#allocation9]   ;;  %s2882_s26 = smov [#allocation8]  }
  0x17   : > { %p3028_p3 = pnand %p2326_p0, %p486_p2  ;;  %s524_s3 = sshll.u32 %s2881_s25, 4  ;;  %s3035_s3 = int_to_ptr.vmem [resolvable:$true] %s524_s3 }
  0x18   : > { %s510_s27 = sshll.u32 %s2882_s26, 4  ;;  %s2883_s29 = smov [#allocation11]   ;;  %s3043_s27 = int_to_ptr.vmem [resolvable:$true] %s510_s27 }
  0x19   : > { %s3514_s24 = scalar_select %p3028_p3, 1, 0 }
  0x1a   : > { %p2525_p5 = pneg %p3028_p3  ;;  %s3045_s0 = sshll.u32 %s2883_s29, 4  ;;  %s539_s0 = int_to_ptr.vmem [resolvable:$true] %s3045_s0 }
  0x1b   : > { %s2655_s17 = scalar_lea.vmem %s500_s2, 16  ;;  %s2662_s25 = scalar_lea.vmem %s500_s2, 32 }
  0x1c   : > { %p3039_p6 = pnand %p2525_p5, %p3494_p1  ;;  %p2656_p8 = scmp.ne.s32.totalorder %s500_s2, %s2655_s17 }
  0x1d   : > { %p2663_p11 = scmp.lt.s32.totalorder %s500_s2, %s500_s2  ;;  %p2664_p12 = scmp.lt.s32.totalorder %s2662_s25, %s2655_s17 }
  0x1e   : > { %p3049_p7 = pneg %p3039_p6 }
  0x1f   : > { %p2665_p13 = por %p2664_p12, %p2663_p11 }
  0x20   : > { %p2658_p9 = pnand %p2656_p8, %p3049_p7 }
  0x22   : > { %p2659_p10 = pneg %p2658_p9 }
  0x24   : > { %p2666_p0 = pnand %p2665_p13, %p2659_p10 }
  0x26   : > { %2669 = shalt.err (!%p2666_p0)
}
  0x27   : > { %s3517_s19 = sld [smem:[#allocation27_spill]]  ;;  %s2681_s18 = scalar_lea.vmem %s3035_s3, 16 }
  0x28   : > { %p2682_p2 = scmp.ne.s32.totalorder %s3035_s3, %s2681_s18  ;;  %s2688_s17 = scalar_lea.vmem %s3035_s3, 32 }
  0x29   : > { %p2689_p9 = scmp.lt.s32.totalorder %s3035_s3, %s3035_s3  ;;  %p2690_p10 = scmp.lt.s32.totalorder %s2688_s17, %s2681_s18 }
  0x2a   : > { %p2684_p5 = pnand %p2682_p2, %p3049_p7 }
  0x2b   : > { %p2691_p11 = por %p2690_p10, %p2689_p9 }
  0x2c   : > { %p2685_p8 = pneg %p2684_p5 }
  0x2d   : > { %2528 = dma.hbm_to_vmem [thread:$0]  (!%p3039_p6), %s3517_s19, 16, %s500_s2, [#allocation7]  }
  0x2e   : > { %p2692_p12 = pnand %p2691_p11, %p2685_p8 }
  0x30   : > { %2695 = shalt.err (!%p2692_p12)
}
  0x31   : > { %s3518_s5 = sld [smem:[#allocation29_spill]]  ;;  %s2707_s19 = scalar_lea.vmem %s3043_s27, 16 }
  0x32   : > { %p2708_p13 = scmp.ne.s32.totalorder %s3043_s27, %s2707_s19  ;;  %s2714_s18 = scalar_lea.vmem %s3043_s27, 32 }
  0x33   : > { %p2715_p5 = scmp.lt.s32.totalorder %s3043_s27, %s3043_s27  ;;  %p2716_p8 = scmp.lt.s32.totalorder %s2714_s18, %s2707_s19 }
  0x34   : > { %p2710_p0 = pnand %p2708_p13, %p3049_p7 }
  0x35   : > { %p2717_p9 = por %p2716_p8, %p2715_p5 }
  0x36   : > { %p2711_p2 = pneg %p2710_p0 }
  0x37   : > { %2534 = dma.hbm_to_vmem [thread:$0]  (!%p3039_p6), %s3518_s5, 16, %s3035_s3, [#allocation10]  }
  0x38   : > { %p2718_p10 = pnand %p2717_p9, %p2711_p2 }
  0x3a   : > { %2721 = shalt.err (!%p2718_p10)
}
  0x3b   : > { %s3519_s17 = sld [smem:[#allocation28_spill]]  ;;  %s2884_s3 = smov [#allocation12]  }
  0x3c   : > { %s549_s25 = sshll.u32 %s2884_s3, 4  ;;  %s2733_s26 = scalar_lea.vmem %s539_s0, 16  ;;  %s550_s25 = int_to_ptr.vmem [resolvable:$true] %s549_s25 }
  0x3d   : > { %p2734_p11 = scmp.ne.s32.totalorder %s539_s0, %s2733_s26  ;;  %s2740_s19 = scalar_lea.vmem %s539_s0, 32 }
  0x3e   : > { %p2741_p0 = scmp.lt.s32.totalorder %s539_s0, %s539_s0  ;;  %p2742_p2 = scmp.lt.s32.totalorder %s2740_s19, %s2733_s26 }
  0x3f   : > { %p2736_p12 = pnand %p2734_p11, %p3049_p7 }
  0x40   : > { %p2743_p5 = por %p2742_p2, %p2741_p0 }
  0x41   : > { %2531 = dma.hbm_to_vmem [thread:$0]  (!%p3039_p6), %s3519_s17, 16, %s3043_s27, [#allocation7]  }
  0x42   : > { %p2737_p13 = pneg %p2736_p12 }
  0x44   : > { %p2744_p8 = pnand %p2743_p5, %p2737_p13 }
  0x46   : > { %2747 = shalt.err (!%p2744_p8)
}
  0x47   : > { %s3520_s7 = sld [smem:[#allocation30_spill]]  ;;  %s2759_s27 = scalar_lea.vmem %s550_s25, 16 }
  0x48   : > { %p2760_p9 = scmp.ne.s32.totalorder %s550_s25, %s2759_s27  ;;  %s2766_s29 = scalar_lea.vmem %s550_s25, 32 }
  0x49   : > { %p2767_p12 = scmp.lt.s32.totalorder %s550_s25, %s550_s25  ;;  %p2768_p4 = scmp.lt.s32.totalorder %s2766_s29, %s2759_s27 }
  0x4a   : > { %p2762_p10 = pnand %p2760_p9, %p3049_p7 }
  0x4b   : > { %p2769_p1 = por %p2768_p4, %p2767_p12 }
  0x4c   : > { %p2763_p11 = pneg %p2762_p10 }
  0x4d   : > { %2537 = dma.hbm_to_vmem [thread:$0]  (!%p3039_p6), %s3520_s7, 16, %s539_s0, [#allocation10]  }
  0x4e   : > { %p2770_p0 = pnand %p2769_p1, %p2763_p11 }
  0x50   : > { %2773 = shalt.err (!%p2770_p0)
}
  0x51   : > { %s3521_s8 = sld [smem:[#allocation31_spill]]  ;;  %s2325_s0 = sadd.s32 4294967294, %s2878_s22  }
  0x52   : > { %s3103_s28 = sadd.s32 1, %s2878_s22   ;;  %s74_s30 = sadd.s32 1, %s2874_s1 }
  0x53   : > { %3522 = sst [smem:[#allocation22_spill]] %s3103_s28  ;;  %s71_s26 = ssub.s32 %s2878_s22, %s3103_s28 }
  0x54   : > { %p81_p1 = scmp.ne.s32.totalorder %s2874_s1, %s2870_s21  ;;  %p72_p4 = scmp.eq.s32.totalorder %s71_s26, 0 }
  0x55   : > { %p82_p7 = scmp.eq.s32.totalorder %s2878_s22, 0  ;;  %p87_p13 = scmp.ne.s32.totalorder %s2870_s21, %s2866_s20 }
  0x56   : > { %p447_p2 = scmp.eq.s32.totalorder %s3023_s23, 1  ;;  %p3524_p8 = scmp.eq.s32.totalorder %s3023_s23, 0 }
  0x57   : > { %2540 = dma.hbm_to_vmem [thread:$0]  (!%p3039_p6), %s3521_s8, 16, %s550_s25, [#allocation13]  }
  0x58   : > { %s3115_s19 = scalar_select %p72_p4, %s2874_s1, %s74_s30  }
  0x59   : > { %p83_p5 = por %p82_p7, %p81_p1  ;;  %p3119_p9 = por %p3524_p8, %p87_p13 }
  0x5a   : > { %3523 = sst [smem:[#allocation23_spill]] %s3115_s19  ;;  %p3123_p6 = por %p447_p2, %p81_p1 }
  0x5b   : > { %s3525_s18 = scalar_select %p3119_p9, 1, 0 }
  0x5c   : > { %s3526_s25 = scalar_select %p3123_p6, 1, 0 }
  0x5d   : > { %p453_p10 = scmp.eq.s32.totalorder %s2325_s0, 1  ;;  %p2554_p11 = scmp.lt.s32.totalorder %s2878_s22, 2 }
  0x5e   : > { %s594_s2 = sand.u32 1, %s2874_s1   ;;  %s2333_s29 = sshll.u32 %s2878_s22, 4 }
  0x5f   : > { %p3129_p12 = por %p453_p10, %p87_p13  ;;  %s3529_s30 = sld [smem:[#allocation26_spill]] }
  0x60   : > { %s597_s5 = scalar_lea.vmem [#allocation3], %s594_s2  ;;  %p3139_p0 = pnand %p2554_p11, %p83_p5 }
  0x61   : > { %s3527_s27 = scalar_select %p3129_p12, 1, 0 }
  0x62   : > { %s604_s7 = sshll.u32 %s597_s5, 4  ;;  %s595_s8 = scalar_lea.sflag [#allocation4], %s594_s2  ;;  %s605_s7 = int_to_ptr.vmem [resolvable:$true] %s604_s7 }
  0x63   : > { %3528 = sst [smem:[#allocation24_spill]] %s3527_s27  ;;  %p2776_p4 = pneg %p3139_p0 }
  0x65   : > { %s3137_s26 = scalar_lea.hbm %s3529_s30, %s2333_s29  ;;  %s2779_s3 = scalar_lea.hbm %s3529_s30, 32 }
  0x66   : > { %s2774_s19 = scalar_lea.hbm %s3137_s26, 16  ;;  %p2780_p2 = scmp.lt.s32.totalorder %s3137_s26, %s3529_s30 }
  0x67   : > { %p2775_p1 = scmp.ne.s32.totalorder %s3137_s26, %s2774_s19  ;;  %p2781_p5 = scmp.lt.s32.totalorder %s2779_s3, %s2774_s19 }
  0x69   : > { %p2777_p7 = pnand %p2776_p4, %p2775_p1  ;;  %p2782_p8 = por %p2781_p5, %p2780_p2 }
  0x6b   : > { %p2778_p13 = pneg %p2777_p7 }
  0x6d   : > { %p2783_p10 = pnand %p2782_p8, %p2778_p13 }
  0x6f   : > { %2786 = shalt.err (!%p2783_p10)
}
  0x70   : > { %s2787_s5 = scalar_lea.vmem %s605_s7, 16  ;;  %s2885_s2 = smov [#allocation3]  }
  0x71   : > { %p2788_p11 = scmp.ne.s32.totalorder %s605_s7, %s2787_s5  ;;  %s2792_s22 = sshll.u32 %s2885_s2, 4  ;;  %s2793_s22 = int_to_ptr.vmem [resolvable:$false] %s2792_s22 }
  0x72   : > { %s2794_s27 = scalar_lea.vmem %s2793_s22, 32  ;;  %p2795_p1 = scmp.lt.s32.totalorder %s605_s7, %s2793_s22 }
  0x73   : > { %p2790_p12 = pnand %p2788_p11, %p2776_p4  ;;  %p2796_p7 = scmp.lt.s32.totalorder %s2794_s27, %s2787_s5 }
  0x75   : > { %p2791_p6 = pneg %p2790_p12  ;;  %p2797_p9 = por %p2796_p7, %p2795_p1 }
  0x77   : > { %p2798_p3 = pnand %p2797_p9, %p2791_p6 }
  0x79   : > { %2801 = shalt.err (!%p2798_p3)
}
  0x7a   : > { %2544 = dma.hbm_to_vmem [thread:$0]  (!%p3139_p0), %s3137_s26, 16, %s605_s7, %s595_s8  }
  0x7b   : > { %p3531_p13 = scmp.ne.s32.totalorder %s3514_s24, 0 }
  0x7c   : > { %s3160_s1 = sand.u32 (!%p3531_p13), 1, %s2870_s21   ;;  %p3532_p12 = scmp.ne.s32.totalorder (!%p3531_p13), %s3525_s18, 0 }
  0x7d   : > { %613 = sbr.rel (%p3531_p13) target bundleno = 2796 (0xaec), region = 92  ;;  %s616_s28 = scalar_lea.sflag (!%p3531_p13), [#allocation4], %s3160_s1 }
  0x7e   : > { %s618_s19 = scalar_lea.vmem (!%p3531_p13), [#allocation3], %s3160_s1 }
  0x82   : > { %2845 = dma.done.wait (%p3532_p12), %s616_s28, 16  }
  0x83   : > { %2847 = vsyncadd (%p3532_p12), %s616_s28, 4294967280  ;;  %p3533_p3 = scmp.eq.s32.totalorder %s3023_s23, 0 }
  0x85   : > { %2849 = dma.done.wait (%p3533_p3), [#allocation7], 32   ;;  %p3534_p9 = pmov %p3533_p3 }
  0x86   : > { %p3535_p6 = pmov %p3533_p3 }
  0x87   : > { %2851 = vsyncadd (%p3534_p9), [#allocation7], 4294967264 }
  0x88   : > { %2853 = dma.done.wait (%p3535_p6), [#allocation10], 32   ;;  %p3536_p0 = pmov %p3533_p3 }
  0x8a   : > { %2855 = vsyncadd (%p3536_p0), [#allocation10], 4294967264  ;;  %p3537_p4 = pmov %p3536_p0 }
  0x8b   : > { %p3538_p2 = pmov %p3536_p0 }
  0x8c   : > { %2857 = dma.done.wait (%p3537_p4), [#allocation13], 16  }
  0x8d   : > { %2859 = vsyncadd (%p3538_p2), [#allocation13], 4294967280  ;;  %p699_p5 = scmp.lt.s32.totalorder %s3023_s23, 1  ;;  %s3539_s18 = sld [smem:[#allocation25_spill]]  ;;  %vm710_vm0 = vcmask 261120   ;;  %v2610_v5 = vld [vmem:[%s3476_s4 + $0x8] sm:$0xff]   ;;  %v824_v36 = vlaneseq }
  0x8e   : > { %v2886_v6 = vmov 0.0   ;;  %vm2887_vm1 = vmmov 0   ;;  %v2611_v7 = vld [vmem:[%s3476_s4] sm:$0xff]   ;;  %s2888_s3 = smov 104   ;;  %s2889_s5 = smov 120   ;;  %vm1277_vm2 = vcmask 64512  }
  0x8f   : > { %s3182_s7 = scalar_select %p699_p5, %s3023_s23, 1  ;;  %2417 = vmatprep.subr.bf16.mxu0 %v2886_v6  ;;  %2421 = vmatprep.mubr.msk.bf16.mxu0 %vm2887_vm1, %v2886_v6  ;;  %v2342_v17 = vld [vmem:[#allocation6] ss:$0 sm:$0xff]  ;;  %v2343_v19 = vld [vmem:[#allocation8] ss:$0 sm:$0xff]  ;;  %v825_v41 = vshrl.u32 %v824_v36, 7 }
  0x90   : > { %2418 = vmatpush3.bf16.msra.mxu0 %v2610_v5  ;;  %2425 = vmatprep.subr.bf16.mxu1 %v2886_v6  ;;  %v2344_v23 = vld [vmem:[#allocation9] ss:$0 sm:$0xff]  ;;  %s2890_s2 = smov 112   ;;  %s2891_s28 = smov 96   ;;  %v2892_v34 = vmov 1983009808  }
  0x91   : > { %s2341_s8 = sshll.u32 %s3182_s7, 3  ;;  %2419 = vmatprep.subr.bf16.mxu0 %v2886_v6  ;;  %2427 = vmatprep.mubr.msk.bf16.mxu1 %vm2887_vm1, %v2886_v6  ;;  %v822_v35 = vunpack.c.l.s4 %v2892_v34  ;;  %v2893_v38 = vmov 1934713408   ;;  %vm1513_vm3 = vcmask 1043456   ;;  %s2896_s26 = smov 8   ;;  %vm1844_vm4 = vcmask 130048  }
  0x92   : > { %v854_v39 = vunpack.c.l.s4 %v2893_v38  ;;  %s2897_s0 = smov 24   ;;  %vm1846_vm5 = vcmask 195584   ;;  %vm2063_vm6 = vcmask 523264   ;;  %vm2151_vm7 = vcmask 253952   ;;  %p3541_p10 = scmp.ne.s32.totalorder %s3526_s25, 0 }
  0x93   : > { %s702_s27 = scalar_lea.vmem %s3539_s18, %s2341_s8  ;;  %v823_v40 = vunpack.c.0.s8 %v822_v35 }
  0x94   : > { %v707_v1 = vld [vmem:[%s702_s27] sm:$0xff]  ;;  %2420 = vmatpush3.bf16.msra.mxu0 %v2611_v7  ;;  %v855_v43 = vunpack.c.0.s8 %v854_v39  ;;  %s2895_s27 = smov 16  }
  0x95   : > { %v711_v2 = vsel %vm710_vm0, %v707_v1, 0.0  ;;  %v716_v3 = vmul.f32 %v707_v1, %v707_v1  ;;  %2431 = vmatprep.subr.bf16.mxu0 %v2886_v6  ;;  %v3232_v44 = vsub.s32 %v823_v40, %v825_v41 }
  0x96   : > { %712 = vadd.xlane.f32.xlu0 %v711_v2  ;;  %v3234_v50 = vsub.s32 %v855_v43, %v825_v41 }
  0x97   : > { %v717_v4 = vsel %vm710_vm0, %v716_v3, 0.0 }
  0x9a   : > { %718 = vadd.xlane.f32.xlu0 %v717_v4 }
 0x11f   : > { %v713_v8 = vpop.xlane.xlu0 %712 }
 0x120   : > { %v715_v9 = vmul.f32 0.03125, %v713_v8 }
 0x122   : > { %v721_v11 = vmul.f32 %v715_v9, %v715_v9  ;;  %v723_v15 = vsub.f32 %v707_v1, %v715_v9 }
 0x123   : > { %v719_v10 = vpop.xlane.xlu0 %718 }
 0x124   : > { %v720_v12 = vmul.f32 0.03125, %v719_v10 }
 0x126   : > { %v722_v13 = vsub.f32 %v720_v12, %v721_v11 }
 0x128   : > { %v724_v14 = vadd.f32 1e-05, %v722_v13 }
 0x12a   : > { %2620 = vrsqrt.f32 %v724_v14 }
 0x137   : > { %v2621_v16 = vpop.eup %2620 }
 0x138   : > { %v726_v18 = vmul.f32 %v2621_v16, %v723_v15 }
 0x13a   : > { %v733_v20 = vmul.f32 %v2342_v17, %v726_v18 }
 0x13c   : > { %v3204_v21 = vadd.f32 %v2343_v19, %v733_v20 }
 0x13e   : > { %v741_v22 = vpack.c.bf16 %v3204_v21, %v3204_v21 }
 0x140   : > { %2422 = vmatmul.mubr.msk.bf16.vlgmr.msra.gmra.mxu0 %vm710_vm0, %v741_v22 }
 0x141   : > { %2433 = vmatprep.mubr.msk.bf16.mxu0 %vm2887_vm1, %v2886_v6 }
 0x200   : > { %v802_v24 = vpop.f32.mrf.mxu0 }
 0x201   : > { %v3211_v25 = vadd.f32 %v2344_v23, %v802_v24 }
 0x202   : > { %v2423_v26 = vpop.f32.mrf.mxu0 }
 0x203   : > { %964 = vrot.lane.b32.xlu0 %v3211_v25, %s2888_s3  ;;  %960 = vrot.lane.b32.xlu1 %v3211_v25, %s2889_s5  ;;  %v3216_v28 = vmul.f32 0.35355338, %v3211_v25 }
 0x204   : > { %v805_v27 = vpop.f32.mrf.mxu0 }
 0x206   : > { %v2424_v29 = vpop.f32.mrf.mxu0 }
 0x207   : > { %962 = vrot.lane.b32.xlu1 %v3211_v25, %s2890_s2  ;;  %816 = vrot.lane.b32.xlu0 %v3216_v28, %s2888_s3  ;;  %s3540_s3 = sld [smem:[#allocation32_spill]] }
 0x20b   : > { %966 = vrot.lane.b32.xlu1 %v3211_v25, %s2891_s28 }
 0x275   : > { %v3221_v30 = vpop.permute.xlu1 %960  ;;  %v3227_v32 = vpop.permute.xlu0 %964 }
 0x276   : > { %968 = vrot.lane.b32.xlu1 %v3221_v30, %s2891_s28 }
 0x279   : > { %v3224_v31 = vpop.permute.xlu1 %962  ;;  %v817_v60 = vpop.permute.xlu0 %816 }
 0x27a   : > { %970 = vrot.lane.b32.xlu1 %v3224_v31, %s2891_s28 }
 0x27d   : > { %v967_v33 = vpop.permute.xlu1 %966 }
 0x27e   : > { %972 = vrot.lane.b32.xlu1 %v3227_v32, %s2891_s28 }
 0x282   : > { %810 = vrot.lane.b32.xlu1 %v3216_v28, %s2889_s5 }
 0x286   : > { %813 = vrot.lane.b32.xlu1 %v3216_v28, %s2890_s2  ;;  %s2160_s2 = scalar_lea.sflag [#allocation5], %s3160_s1 }
 0x2e8   : > { %v969_v37 = vpop.permute.xlu1 %968 }
 0x2ec   : > { %v971_v42 = vpop.permute.xlu1 %970 }
 0x2ed   : > { %v978_v45 = vcombine.low %v967_v33, %v971_v42  ;;  %v979_v46 = vcombine.high %v967_v33, %v971_v42 }
 0x2ef   : > { %v986_v51 = vrot.slane %v978_v45, %v3232_v44  ;;  %v993_v52 = vrot.slane %v979_v46, %v3232_v44 }
 0x2f0   : > { %v973_v47 = vpop.permute.xlu1 %972 }
 0x2f1   : > { %v994_v48 = vcombine.low %v969_v37, %v973_v47  ;;  %v995_v49 = vcombine.high %v969_v37, %v973_v47 }
 0x2f3   : > { %v1002_v53 = vrot.slane %v994_v48, %v3232_v44  ;;  %v1009_v54 = vrot.slane %v995_v49, %v3232_v44 }
 0x2f4   : > { %v811_v55 = vpop.permute.xlu1 %810 }
 0x2f5   : > { %v1010_v56 = vcombine.low %v986_v51, %v1002_v53  ;;  %v1011_v57 = vcombine.high %v986_v51, %v1002_v53  ;;  %v1026_v58 = vcombine.low %v993_v52, %v1009_v54  ;;  %v1027_v59 = vcombine.high %v993_v52, %v1009_v54 }
 0x2f6   : > { %v835_v1 = vcombine.low %v811_v55, %v817_v60  ;;  %v836_v2 = vcombine.high %v811_v55, %v817_v60 }
 0x2f7   : > { %v1018_v61 = vrot.slane %v1010_v56, %v3234_v50  ;;  %v1025_v62 = vrot.slane %v1011_v57, %v3234_v50  ;;  %v1034_v63 = vrot.slane %v1026_v58, %v3234_v50  ;;  %v1041_v0 = vrot.slane %v1027_v59, %v3234_v50 }
 0x2f8   : > { %v814_v3 = vpop.permute.xlu1 %813  ;;  %v843_v15 = vrot.slane %v835_v1, %v3232_v44  ;;  %v850_v16 = vrot.slane %v836_v2, %v3232_v44 }
 0x2f9   : > { %v1046_v4 = vcombine.low %v1018_v61, %v1025_v62  ;;  %v2350_v5 = vcombine.high %v1018_v61, %v1025_v62  ;;  %v1062_v7 = vcombine.low %v1034_v63, %v1041_v0  ;;  %v2351_v8 = vcombine.high %v1034_v63, %v1041_v0 }
 0x2fa   : > { %v819_v9 = vcombine.low %v3216_v28, %v814_v3  ;;  %v820_v10 = vcombine.high %v3216_v28, %v814_v3 }
 0x2fb   : > { %v1053_v11 = vrot.slane %v1046_v4, %v3232_v44  ;;  %v1061_v12 = vrot.slane %v2350_v5, %v3232_v44  ;;  %v1069_v13 = vrot.slane %v1062_v7, %v3232_v44  ;;  %v1077_v14 = vrot.slane %v2351_v8, %v3232_v44 }
 0x2fc   : > { %v827_v17 = vrot.slane %v819_v9, %v3232_v44  ;;  %v834_v18 = vrot.slane %v820_v10, %v3232_v44 }
 0x2fd   : > { %v1078_v19 = vcombine.low %v1053_v11, %v1061_v12  ;;  %v1094_v20 = vcombine.low %v1069_v13, %v1077_v14  ;;  %v1079_v29 = vcombine.high %v1053_v11, %v1061_v12  ;;  %v1095_v33 = vcombine.high %v1069_v13, %v1077_v14 }
 0x2fe   : > { %v851_v22 = vcombine.low %v827_v17, %v843_v15  ;;  %v852_v23 = vcombine.high %v827_v17, %v843_v15  ;;  %v867_v24 = vcombine.low %v834_v18, %v850_v16  ;;  %v868_v26 = vcombine.high %v834_v18, %v850_v16  ;;  %v2354_v15 = vld [vmem:[%s618_s19] ss:$0 sm:$0xff]  ;;  %s2894_s19 = smov 64  }
 0x2ff   : > { %v1086_v27 = vrot.slane %v1078_v19, %v3234_v50  ;;  %v1102_v28 = vrot.slane %v1094_v20, %v3234_v50  ;;  %v1093_v47 = vrot.slane %v1079_v29, %v3234_v50  ;;  %v1109_v48 = vrot.slane %v1095_v33, %v3234_v50 }
 0x300   : > { %v859_v34 = vrot.slane %v851_v22, %v3234_v50  ;;  %v866_v35 = vrot.slane %v852_v23, %v3234_v50  ;;  %v875_v36 = vrot.slane %v867_v24, %v3234_v50  ;;  %v882_v37 = vrot.slane %v868_v26, %v3234_v50 }
 0x301   : > { %v1110_v38 = vcombine.low %v1086_v27, %v1102_v28  ;;  %v1111_v39 = vcombine.high %v1086_v27, %v1102_v28  ;;  %v1112_v58 = vcombine.low %v1093_v47, %v1109_v48  ;;  %v1113_v59 = vcombine.high %v1093_v47, %v1109_v48 }
 0x302   : > { %v887_v40 = vcombine.low %v859_v34, %v866_v35  ;;  %v2348_v41 = vcombine.high %v859_v34, %v866_v35  ;;  %v903_v42 = vcombine.low %v875_v36, %v882_v37  ;;  %v2349_v43 = vcombine.high %v875_v36, %v882_v37 }
 0x303   : > { %v1114_v45 = vpack.c.bf16 %v1110_v38, %v1110_v38  ;;  %v1115_v46 = vpack.c.bf16 %v1111_v39, %v1111_v39  ;;  %v1116_v2 = vpack.c.bf16 %v1112_v58, %v1112_v58  ;;  %v1117_v3 = vpack.c.bf16 %v1113_v59, %v1113_v59 }
 0x304   : > { %v894_v49 = vrot.slane %v887_v40, %v3232_v44  ;;  %v902_v51 = vrot.slane %v2348_v41, %v3232_v44  ;;  %v910_v52 = vrot.slane %v903_v42, %v3232_v44  ;;  %v918_v53 = vrot.slane %v2349_v43, %v3232_v44 }
 0x305   : > { %v1282_v54 = vsel %vm1277_vm2, %v1114_v45, 0  ;;  %v1328_v55 = vsel %vm1277_vm2, %v1115_v46, 0  ;;  %v1374_v9 = vsel %vm1277_vm2, %v1116_v2, 0  ;;  %v1420_v10 = vsel %vm1277_vm2, %v1117_v3, 0 }
 0x306   : > { %2426 = vmatpush3.bf16.xpose.msra.mxu1 %v1282_v54  ;;  %2432 = vmatpush3.bf16.xpose.msra.mxu0 %v1328_v55  ;;  %v919_v56 = vcombine.low %v894_v49, %v902_v51  ;;  %v935_v57 = vcombine.low %v910_v52, %v918_v53  ;;  %v920_v61 = vcombine.high %v894_v49, %v902_v51 }
 0x307   : > { %2437 = vmatprep.subr.bf16.mxu1 %v2886_v6  ;;  %2443 = vmatprep.subr.bf16.mxu0 %v2886_v6  ;;  %v936_v62 = vcombine.high %v910_v52, %v918_v53 }
 0x308   : > { %v927_v60 = vrot.slane %v919_v56, %v3234_v50  ;;  %v943_v63 = vrot.slane %v935_v57, %v3234_v50  ;;  %v934_v7 = vrot.slane %v920_v61, %v3234_v50 }
 0x309   : > { %v950_v8 = vrot.slane %v936_v62, %v3234_v50 }
 0x30a   : > { %v951_v0 = vcombine.low %v927_v60, %v943_v63  ;;  %v952_v1 = vcombine.high %v927_v60, %v943_v63 }
 0x30b   : > { %v953_v11 = vcombine.low %v934_v7, %v950_v8  ;;  %v954_v12 = vcombine.high %v934_v7, %v950_v8 }
 0x30c   : > { %v955_v4 = vpack.c.bf16 %v951_v0, %v951_v0  ;;  %v956_v5 = vpack.c.bf16 %v952_v1, %v952_v1 }
 0x30d   : > { %v957_v13 = vpack.c.bf16 %v953_v11, %v953_v11  ;;  %v958_v14 = vpack.c.bf16 %v954_v12, %v954_v12 }
 0x30e   : > { %2428 = vmatmul.mubr.msk.bf16.vlgmr.msra.gmra.mxu1 %vm1277_vm2, %v955_v4  ;;  %2434 = vmatmul.mubr.msk.bf16.vlgmr.msra.gmra.mxu0 %vm1277_vm2, %v956_v5 }
 0x30f   : > { %2438 = vmatpush3.bf16.xpose.msra.mxu1 %v1374_v9  ;;  %2444 = vmatpush3.bf16.xpose.msra.mxu0 %v1420_v10 }
 0x310   : > { %2439 = vmatprep.mubr.msk.bf16.mxu1 %vm2887_vm1, %v2886_v6  ;;  %2445 = vmatprep.mubr.msk.bf16.mxu0 %vm2887_vm1, %v2886_v6 }
 0x311   : > { %2449 = vmatprep.subr.bf16.mxu1 %v2886_v6  ;;  %2455 = vmatprep.subr.bf16.mxu0 %v2886_v6 }
 0x316   : > { %2440 = vmatmul.mubr.msk.bf16.vlgmr.msra.gmra.mxu1 %vm1277_vm2, %v957_v13  ;;  %2446 = vmatmul.mubr.msk.bf16.vlgmr.msra.gmra.mxu0 %vm1277_vm2, %v958_v14 }
 0x317   : > { %2451 = vmatprep.mubr.msk.bf16.mxu1 %vm2887_vm1, %v2886_v6  ;;  %2457 = vmatprep.mubr.msk.bf16.mxu0 %vm2887_vm1, %v2886_v6 }
 0x3ce   : > { %v1318_v16 = vpop.f32.mrf.mxu1  ;;  %v1364_v17 = vpop.f32.mrf.mxu0 }
 0x3cf   : > { %v1319_v18 = vadd.f32 %v2354_v15, %v1318_v16  ;;  %v1365_v19 = vadd.f32 %v2354_v15, %v1364_v17 }
 0x3d0   : > { %v2429_v20 = vpop.f32.mrf.mxu1  ;;  %v2435_v22 = vpop.f32.mrf.mxu0 }
 0x3d1   : > { %v1462_v23 = vsel %vm1277_vm2, %v1319_v18, -inf  ;;  %v1465_v24 = vsel %vm1277_vm2, %v1365_v19, -inf }
 0x3d2   : > { %1463 = vmax.xlane.f32.xlu1 %v1462_v23  ;;  %v1321_v26 = vpop.f32.mrf.mxu1  ;;  %1466 = vmax.xlane.f32.xlu0 %v1465_v24  ;;  %v1367_v27 = vpop.f32.mrf.mxu0 }
 0x3d4   : > { %v2430_v28 = vpop.f32.mrf.mxu1  ;;  %v2436_v29 = vpop.f32.mrf.mxu0 }
 0x3d6   : > { %v1410_v33 = vpop.f32.mrf.mxu1  ;;  %v1456_v34 = vpop.f32.mrf.mxu0 }
 0x3d7   : > { %v1411_v35 = vadd.f32 %v2354_v15, %v1410_v33  ;;  %v1457_v36 = vadd.f32 %v2354_v15, %v1456_v34 }
 0x3d8   : > { %v2441_v37 = vpop.f32.mrf.mxu1  ;;  %v2447_v38 = vpop.f32.mrf.mxu0 }
 0x3d9   : > { %v1468_v39 = vsel %vm1277_vm2, %v1411_v35, -inf  ;;  %v1471_v40 = vsel %vm1277_vm2, %v1457_v36, -inf }
 0x3da   : > { %v1413_v41 = vpop.f32.mrf.mxu1  ;;  %1469 = vmax.xlane.f32.xlu0 %v1468_v39  ;;  %1472 = vmax.xlane.f32.xlu1 %v1471_v40  ;;  %v1459_v42 = vpop.f32.mrf.mxu0 }
 0x3dc   : > { %v2442_v43 = vpop.f32.mrf.mxu1  ;;  %v2448_v45 = vpop.f32.mrf.mxu0 }
 0x3eb   : > { %1120 = vrot.lane.b32.xlu1 %v3221_v30, %s2894_s19 }
 0x3f0   : > { %1118 = vrot.lane.b32.xlu0 %v3211_v25, %s2894_s19 }
 0x45b   : > { %v1464_v46 = vpop.xlane.xlu1 %1463  ;;  %v1467_v47 = vpop.xlane.xlu0 %1466 }
 0x45c   : > { %v1474_v48 = vsub.f32 %v1319_v18, %v1464_v46  ;;  %v1475_v49 = vsub.f32 %v1365_v19, %v1467_v47 }
 0x45e   : > { %v1478_v51 = vmul.f32 1.442695, %v1474_v48  ;;  %v1480_v52 = vmul.f32 1.442695, %v1475_v49 }
 0x460   : > { %2622 = vpow2.f32 %v1478_v51 }
 0x461   : > { %2624 = vpow2.f32 %v1480_v52 }
 0x463   : > { %v1473_v25 = vpop.xlane.xlu1 %1472  ;;  %v1470_v56 = vpop.xlane.xlu0 %1469 }
 0x464   : > { %v1477_v57 = vsub.f32 %v1457_v36, %v1473_v25  ;;  %v1476_v58 = vsub.f32 %v1411_v35, %v1470_v56 }
 0x466   : > { %v1484_v59 = vmul.f32 1.442695, %v1477_v57  ;;  %v1482_v60 = vmul.f32 1.442695, %v1476_v58 }
 0x467   : > { %v1121_v0 = vpop.permute.xlu1 %1120 }
 0x468   : > { %2626 = vpow2.f32 %v1484_v59 }
 0x469   : > { %2628 = vpow2.f32 %v1482_v60 }
 0x46d   : > { %v3298_v53 = vpop.eup %2622 }
 0x46e   : > { %v3300_v54 = vpop.eup %2624  ;;  %v1486_v55 = vsel %vm1277_vm2, %v3298_v53, 0.0 }
 0x46f   : > { %1487 = vadd.xlane.f32.xlu0 %v1486_v55  ;;  %v1489_v30 = vsel %vm1277_vm2, %v3300_v54, 0.0 }
 0x470   : > { %1490 = vadd.xlane.f32.xlu1 %v1489_v30 }
 0x475   : > { %v3308_v61 = vpop.eup %2626 }
 0x476   : > { %v3310_v62 = vpop.eup %2628  ;;  %v1495_v63 = vsel %vm1277_vm2, %v3308_v61, 0.0 }
 0x481   : > { %1122 = vrot.lane.b32.xlu1 %v3224_v31, %s2894_s19  ;;  %v1492_v31 = vsel %vm1277_vm2, %v3310_v62, 0.0 }
 0x485   : > { %1124 = vrot.lane.b32.xlu0 %v3227_v32, %s2894_s19  ;;  %v1119_v32 = vpop.permute.xlu0 %1118  ;;  %s2340_s19 = sshll.u32 %s3160_s1, 3 }
 0x486   : > { %s693_s24 = scalar_lea.vmem [#allocation14], %s2340_s19  ;;  %s2898_s19 = smov [#allocation14]  }
 0x487   : > { %s2806_s8 = sshll.u32 %s2898_s19, 4  ;;  %s2807_s8 = int_to_ptr.vmem [resolvable:$false] %s2806_s8 }
 0x488   : > { %s2808_s22 = scalar_lea.vmem %s2807_s8, 256 }
 0x4a4   : > { %1496 = vadd.xlane.f32.xlu0 %v1495_v63 }
 0x4a5   : > { %1493 = vadd.xlane.f32.xlu1 %v1492_v31 }
 0x4f8   : > { %v1488_v1 = vpop.xlane.xlu0 %1487 }
 0x4f9   : > { %v1491_v2 = vpop.xlane.xlu1 %1490  ;;  %2630 = vrcp.f32 %v1488_v1 }
 0x4fa   : > { %2632 = vrcp.f32 %v1491_v2 }
 0x4fc   : > { %v1125_v3 = vpop.permute.xlu0 %1124 }
 0x4fd   : > { %v1146_v4 = vcombine.low %v1121_v0, %v1125_v3  ;;  %v1147_v5 = vcombine.high %v1121_v0, %v1125_v3  ;;  %v1123_v7 = vpop.permute.xlu1 %1122 }
 0x4fe   : > { %v1130_v8 = vcombine.low %v1119_v32, %v1123_v7  ;;  %v1131_v9 = vcombine.high %v1119_v32, %v1123_v7 }
 0x4ff   : > { %v1154_v10 = vrot.slane %v1146_v4, %v3232_v44  ;;  %v1161_v11 = vrot.slane %v1147_v5, %v3232_v44 }
 0x500   : > { %v1138_v12 = vrot.slane %v1130_v8, %v3232_v44  ;;  %v1145_v13 = vrot.slane %v1131_v9, %v3232_v44 }
 0x502   : > { %v1162_v14 = vcombine.low %v1138_v12, %v1154_v10  ;;  %v1163_v15 = vcombine.high %v1138_v12, %v1154_v10  ;;  %v1178_v16 = vcombine.low %v1145_v13, %v1161_v11  ;;  %v1179_v17 = vcombine.high %v1145_v13, %v1161_v11 }
 0x504   : > { %v1170_v18 = vrot.slane %v1162_v14, %v3234_v50  ;;  %v1177_v19 = vrot.slane %v1163_v15, %v3234_v50  ;;  %v1186_v20 = vrot.slane %v1178_v16, %v3234_v50  ;;  %v1193_v22 = vrot.slane %v1179_v17, %v3234_v50 }
 0x506   : > { %v1198_v23 = vcombine.low %v1170_v18, %v1177_v19  ;;  %v2352_v24 = vcombine.high %v1170_v18, %v1177_v19  ;;  %v1214_v26 = vcombine.low %v1186_v20, %v1193_v22  ;;  %v2353_v27 = vcombine.high %v1186_v20, %v1193_v22  ;;  %v2631_v39 = vpop.eup %2630 }
 0x507   : > { %v2633_v45 = vpop.eup %2632  ;;  %v1502_v55 = vmul.f32 %v2631_v39, %v3298_v53 }
 0x508   : > { %v1205_v28 = vrot.slane %v1198_v23, %v3232_v44  ;;  %v1213_v29 = vrot.slane %v2352_v24, %v3232_v44  ;;  %v1221_v33 = vrot.slane %v1214_v26, %v3232_v44  ;;  %v1229_v34 = vrot.slane %v2353_v27, %v3232_v44 }
 0x509   : > { %v1503_v30 = vmul.f32 %v2633_v45, %v3300_v54  ;;  %v1506_v59 = vpack.c.bf16 %v1502_v55, %v1502_v55 }
 0x50a   : > { %v1230_v35 = vcombine.low %v1205_v28, %v1213_v29  ;;  %v1246_v36 = vcombine.low %v1221_v33, %v1229_v34  ;;  %v1231_v37 = vcombine.high %v1205_v28, %v1213_v29  ;;  %v1247_v38 = vcombine.high %v1221_v33, %v1229_v34 }
 0x50b   : > { %v1507_v60 = vpack.c.bf16 %v1503_v30, %v1503_v30 }
 0x50c   : > { %v1238_v40 = vrot.slane %v1230_v35, %v3234_v50  ;;  %v1254_v41 = vrot.slane %v1246_v36, %v3234_v50  ;;  %v1245_v42 = vrot.slane %v1231_v37, %v3234_v50  ;;  %v1261_v43 = vrot.slane %v1247_v38, %v3234_v50  ;;  %v2612_v36 = vld [vmem:[%s3478_s6 + $0x8] sm:$0xff]  }
 0x50e   : > { %v1262_v46 = vcombine.low %v1238_v40, %v1254_v41  ;;  %v1263_v47 = vcombine.high %v1238_v40, %v1254_v41  ;;  %v1264_v48 = vcombine.low %v1245_v42, %v1261_v43  ;;  %v1265_v49 = vcombine.high %v1245_v42, %v1261_v43 }
 0x510   : > { %v1266_v51 = vpack.c.bf16 %v1262_v46, %v1262_v46  ;;  %v1267_v52 = vpack.c.bf16 %v1263_v47, %v1263_v47  ;;  %v1268_v57 = vpack.c.bf16 %v1264_v48, %v1264_v48  ;;  %v1269_v58 = vpack.c.bf16 %v1265_v49, %v1265_v49  ;;  %v2613_v47 = vld [vmem:[%s3478_s6] sm:$0xff]  }
 0x512   : > { %v1515_v25 = vsel %vm1513_vm3, %v1266_v51, 0  ;;  %v1561_v56 = vsel %vm1513_vm3, %v1267_v52, 0  ;;  %v1607_v53 = vsel %vm1513_vm3, %v1268_v57, 0  ;;  %v1653_v54 = vsel %vm1513_vm3, %v1269_v58, 0 }
 0x513   : > { %2450 = vmatpush3.bf16.msra.mxu1 %v1515_v25  ;;  %2456 = vmatpush3.bf16.msra.mxu0 %v1561_v56 }
 0x514   : > { %2461 = vmatprep.subr.bf16.mxu1 %v2886_v6  ;;  %2467 = vmatprep.subr.bf16.mxu0 %v2886_v6 }
 0x516   : > { %2452 = vmatmul.mubr.msk.bf16.vlgmr.msra.gmra.mxu1 %vm1277_vm2, %v1506_v59  ;;  %2458 = vmatmul.mubr.msk.bf16.vlgmr.msra.gmra.mxu0 %vm1277_vm2, %v1507_v60 }
 0x517   : > { %2462 = vmatpush3.bf16.msra.mxu1 %v1607_v53  ;;  %2468 = vmatpush3.bf16.msra.mxu0 %v1653_v54 }
 0x518   : > { %2463 = vmatprep.mubr.msk.bf16.mxu1 %vm2887_vm1, %v2886_v6  ;;  %2469 = vmatprep.mubr.msk.bf16.mxu0 %vm2887_vm1, %v2886_v6 }
 0x519   : > { %2473 = vmatprep.subr.bf16.mxu1 %v2886_v6  ;;  %2481 = vmatprep.subr.bf16.mxu0 %v2886_v6 }
 0x52d   : > { %v1497_v63 = vpop.xlane.xlu0 %1496 }
 0x52e   : > { %2634 = vrcp.f32 %v1497_v63  ;;  %v1494_v31 = vpop.xlane.xlu1 %1493 }
 0x52f   : > { %2636 = vrcp.f32 %v1494_v31 }
 0x53b   : > { %v2635_v32 = vpop.eup %2634 }
 0x53c   : > { %v2637_v0 = vpop.eup %2636  ;;  %v1505_v1 = vmul.f32 %v2635_v32, %v3308_v61 }
 0x53d   : > { %v1504_v2 = vmul.f32 %v2637_v0, %v3310_v62 }
 0x53e   : > { %v1509_v3 = vpack.c.bf16 %v1505_v1, %v1505_v1 }
 0x53f   : > { %v1508_v4 = vpack.c.bf16 %v1504_v2, %v1504_v2 }
 0x540   : > { %2470 = vmatmul.mubr.msk.bf16.vlgmr.msra.gmra.mxu0 %vm1277_vm2, %v1509_v3 }
 0x541   : > { %2464 = vmatmul.mubr.msk.bf16.vlgmr.msra.gmra.mxu1 %vm1277_vm2, %v1508_v4  ;;  %2485 = vmatprep.mubr.msk.bf16.mxu0 %vm2887_vm1, %v2886_v6  ;;  %v2365_v4 = vld [vmem:[#allocation11] ss:$0 sm:$0xff] }
 0x542   : > { %2477 = vmatprep.mubr.msk.bf16.mxu1 %vm2887_vm1, %v2886_v6  ;;  %2474 = vmatpush3.bf16.msra.mxu1 %v2612_v36  ;;  %v2618_v36 = vld [vmem:[%s3484_s12 + $0x8] sm:$0xff]  }
 0x543   : > { %2475 = vmatprep.subr.bf16.mxu1 %v2886_v6 }
 0x546   : > { %2476 = vmatpush3.bf16.msra.mxu1 %v2613_v47 }
 0x547   : > { %2489 = vmatprep.subr.bf16.mxu1 %v2886_v6 }
 0x5d6   : > { %v1551_v5 = vpop.f32.mrf.mxu1  ;;  %v1597_v7 = vpop.f32.mrf.mxu0 }
 0x5d8   : > { %v2453_v8 = vpop.f32.mrf.mxu1  ;;  %v2459_v9 = vpop.f32.mrf.mxu0 }
 0x5da   : > { %v1554_v10 = vpop.f32.mrf.mxu1  ;;  %v1600_v61 = vpop.f32.mrf.mxu0 }
 0x5dc   : > { %v2454_v11 = vpop.f32.mrf.mxu1  ;;  %v2460_v62 = vpop.f32.mrf.mxu0 }
 0x600   : > { %v1689_v12 = vpop.f32.mrf.mxu0 }
 0x601   : > { %v1643_v13 = vpop.f32.mrf.mxu1  ;;  %v1711_v14 = vcombine.low %v1597_v7, %v1689_v12  ;;  %v1712_v15 = vcombine.high %v1597_v7, %v1689_v12 }
 0x602   : > { %v1695_v16 = vcombine.low %v1551_v5, %v1643_v13  ;;  %v1696_v17 = vcombine.high %v1551_v5, %v1643_v13  ;;  %v2471_v18 = vpop.f32.mrf.mxu0  ;;  %v2614_v13 = vld [vmem:[%s3482_s10 + $0x8] sm:$0xff]  }
 0x603   : > { %v1719_v19 = vrot.slane %v1711_v14, %v3232_v44  ;;  %v1726_v20 = vrot.slane %v1712_v15, %v3232_v44  ;;  %v2465_v22 = vpop.f32.mrf.mxu1  ;;  %2482 = vmatpush3.bf16.msra.mxu0 %v2614_v13  ;;  %v2615_v14 = vld [vmem:[%s3482_s10] sm:$0xff]  }
 0x604   : > { %v1703_v23 = vrot.slane %v1695_v16, %v3232_v44  ;;  %v1710_v24 = vrot.slane %v1696_v17, %v3232_v44  ;;  %v1692_v26 = vpop.f32.mrf.mxu0  ;;  %2483 = vmatprep.subr.bf16.mxu0 %v2886_v6 }
 0x605   : > { %v1646_v27 = vpop.f32.mrf.mxu1 }
 0x606   : > { %v1727_v28 = vcombine.low %v1703_v23, %v1719_v19  ;;  %v1728_v29 = vcombine.high %v1703_v23, %v1719_v19  ;;  %v1743_v33 = vcombine.low %v1710_v24, %v1726_v20  ;;  %v1744_v34 = vcombine.high %v1710_v24, %v1726_v20  ;;  %v2472_v35 = vpop.f32.mrf.mxu0  ;;  %v2369_v24 = vld [vmem:[#allocation12] ss:$0 sm:$0xff]  ;;  %v2370_v27 = vld [vmem:[%s3481_s9] ss:$0 sm:$0xff] }
 0x607   : > { %v2466_v37 = vpop.f32.mrf.mxu1  ;;  %2484 = vmatpush3.bf16.msra.mxu0 %v2615_v14  ;;  %v2617_v35 = vld [vmem:[%s3484_s12 + $0x10] sm:$0xff]  }
 0x608   : > { %v1735_v38 = vrot.slane %v1727_v28, %v3234_v50  ;;  %v1742_v39 = vrot.slane %v1728_v29, %v3234_v50  ;;  %v1751_v40 = vrot.slane %v1743_v33, %v3234_v50  ;;  %v1758_v41 = vrot.slane %v1744_v34, %v3234_v50  ;;  %v2616_v34 = vld [vmem:[%s3484_s12 + $0x18] sm:$0xff]   ;;  %v2619_v37 = vld [vmem:[%s3484_s12] sm:$0xff]  }
 0x60a   : > { %v1763_v42 = vcombine.low %v1735_v38, %v1742_v39  ;;  %v2363_v43 = vcombine.high %v1735_v38, %v1742_v39  ;;  %v1779_v45 = vcombine.low %v1751_v40, %v1758_v41  ;;  %v2364_v46 = vcombine.high %v1751_v40, %v1758_v41  ;;  %v2371_v38 = vld [vmem:[%s3483_s11] ss:$0 sm:$0xff] }
 0x60c   : > { %v1770_v48 = vrot.slane %v1763_v42, %v3232_v44  ;;  %v1778_v49 = vrot.slane %v2363_v43, %v3232_v44  ;;  %v1786_v51 = vrot.slane %v1779_v45, %v3232_v44  ;;  %v1794_v52 = vrot.slane %v2364_v46, %v3232_v44 }
 0x60e   : > { %v1796_v55 = vcombine.high %v1770_v48, %v1778_v49  ;;  %v1812_v30 = vcombine.high %v1786_v51, %v1794_v52  ;;  %v1795_v25 = vcombine.low %v1770_v48, %v1778_v49  ;;  %v1811_v56 = vcombine.low %v1786_v51, %v1794_v52 }
 0x610   : > { %v1810_v57 = vrot.slane %v1796_v55, %v3234_v50  ;;  %v1826_v58 = vrot.slane %v1812_v30, %v3234_v50  ;;  %v1803_v59 = vrot.slane %v1795_v25, %v3234_v50  ;;  %v1819_v60 = vrot.slane %v1811_v56, %v3234_v50  ;;  %v2375_v25 = vld [vmem:[%s3485_s13] ss:$0 sm:$0xff] }
 0x612   : > { %v1829_v53 = vcombine.low %v1810_v57, %v1826_v58  ;;  %v1828_v54 = vcombine.high %v1803_v59, %v1819_v60  ;;  %v1827_v63 = vcombine.low %v1803_v59, %v1819_v60  ;;  %v1830_v44 = vcombine.high %v1810_v57, %v1826_v58 }
 0x614   : > { %1836 = vrot.lane.b32.xlu1 %v1829_v53, %s2895_s27  ;;  %1832 = vrot.lane.b32.xlu0 %v1828_v54, %s2896_s26  ;;  %s2384_s26 = sshll.u32 %s3023_s23, 7 }
 0x615   : > { %s2174_s5 = scalar_lea.hbm %s3540_s3, %s2384_s26 }
 0x618   : > { %1840 = vrot.lane.b32.xlu1 %v1830_v44, %s2897_s0  ;;  %s2176_s0 = sshll.u32 %s693_s24, 4  ;;  %s2177_s0 = int_to_ptr.vmem [resolvable:$true] %s2176_s0 }
 0x619   : > { %s2802_s28 = scalar_lea.vmem %s2177_s0, 128  ;;  %p2809_p7 = scmp.lt.s32.totalorder %s2177_s0, %s2807_s8 }
 0x61a   : > { %p2803_p8 = scmp.ne.s32.totalorder %s2177_s0, %s2802_s28  ;;  %p2810_p13 = scmp.lt.s32.totalorder %s2808_s22, %s2802_s28 }
 0x61c   : > { %p2804_p11 = pnand %p2803_p8, %p3541_p10  ;;  %p2811_p12 = por %p2810_p13, %p2809_p7 }
 0x61e   : > { %p2805_p1 = pneg %p2804_p11 }
 0x620   : > { %p2812_p3 = pnand %p2811_p12, %p2805_p1 }
 0x686   : > { %v1837_v31 = vpop.permute.xlu1 %1836  ;;  %v1833_v32 = vpop.permute.xlu0 %1832 }
 0x687   : > { %v1843_v0 = vsel %vm1277_vm2, %v1827_v63, %v1833_v32 }
 0x688   : > { %v1845_v2 = vsel %vm1844_vm4, %v1843_v0, %v1837_v31 }
 0x68a   : > { %v1841_v1 = vpop.permute.xlu1 %1840 }
 0x68b   : > { %v1847_v3 = vsel %vm1846_vm5, %v1845_v2, %v1841_v1 }
 0x68c   : > { %v1848_v50 = vpack.c.bf16 %v1847_v3, %v1847_v3 }
 0x68e   : > { %2478 = vmatmul.mubr.msk.bf16.vlgmr.msra.gmra.mxu1 %vm710_vm0, %v1848_v50 }
 0x68f   : > { %2497 = vmatprep.mubr.msk.bf16.mxu1 %vm2887_vm1, %v2886_v6  ;;  %2490 = vmatpush3.bf16.msra.mxu1 %v2616_v34 }
 0x690   : > { %2491 = vmatprep.subr.bf16.mxu1 %v2886_v6 }
 0x693   : > { %2492 = vmatpush3.bf16.msra.mxu1 %v2617_v35 }
 0x694   : > { %2493 = vmatprep.subr.bf16.mxu1 %v2886_v6 }
 0x697   : > { %2494 = vmatpush3.bf16.msra.mxu1 %v2618_v36 }
 0x698   : > { %2495 = vmatprep.subr.bf16.mxu1 %v2886_v6 }
 0x69b   : > { %2496 = vmatpush3.bf16.msra.mxu1 %v2619_v37 }
 0x74e   : > { %v1909_v5 = vpop.f32.mrf.mxu1 }
 0x74f   : > { %v1910_v7 = vadd.f32 %v2365_v4, %v1909_v5 }
 0x750   : > { %v2479_v8 = vpop.f32.mrf.mxu1 }
 0x751   : > { %v1915_v9 = vadd.f32 %v1910_v7, %v3204_v21  ;;  %v2381_v7 = vld [vmem:[%s3486_s14] ss:$0 sm:$0xff] }
 0x752   : > { %v1912_v10 = vpop.f32.mrf.mxu1 }
 0x753   : > { %v1918_v61 = vsel %vm710_vm0, %v1915_v9, 0.0  ;;  %v1922_v11 = vmul.f32 %v1915_v9, %v1915_v9 }
 0x754   : > { %1919 = vadd.xlane.f32.xlu0 %v1918_v61  ;;  %v2480_v62 = vpop.f32.mrf.mxu1 }
 0x755   : > { %v1923_v12 = vsel %vm710_vm0, %v1922_v11, 0.0 }
 0x756   : > { %1924 = vadd.xlane.f32.xlu1 %v1923_v12 }
 0x7dd   : > { %v1920_v21 = vpop.xlane.xlu0 %1919 }
 0x7de   : > { %v1921_v15 = vmul.f32 0.03125, %v1920_v21 }
 0x7df   : > { %v1925_v16 = vpop.xlane.xlu1 %1924 }
 0x7e0   : > { %v1927_v17 = vmul.f32 %v1921_v15, %v1921_v15  ;;  %v1926_v18 = vmul.f32 0.03125, %v1925_v16  ;;  %v1929_v22 = vsub.f32 %v1915_v9, %v1921_v15  ;;  %v2382_v9 = vld [vmem:[%s3487_s15] ss:$0 sm:$0xff] }
 0x7e1   : > { %v2149_v16 = vld [vmem:[%s3488_s16] sm:$0x1] }
 0x7e2   : > { %v1928_v19 = vsub.f32 %v1926_v18, %v1927_v17 }
 0x7e4   : > { %v1930_v20 = vadd.f32 1e-05, %v1928_v19 }
 0x7e6   : > { %2638 = vrsqrt.f32 %v1930_v20 }
 0x7f3   : > { %v2639_v23 = vpop.eup %2638 }
 0x7f4   : > { %v1932_v26 = vmul.f32 %v2639_v23, %v1929_v22 }
 0x7f6   : > { %v1939_v28 = vmul.f32 %v2369_v24, %v1932_v26 }
 0x7f8   : > { %v1946_v29 = vadd.f32 %v2370_v27, %v1939_v28 }
 0x7fa   : > { %v1947_v33 = vpack.c.bf16 %v1946_v29, %v1946_v29 }
 0x7fc   : > { %2486 = vmatmul.mubr.msk.bf16.vlgmr.msra.gmra.mxu0 %vm710_vm0, %v1947_v33 }
 0x8bc   : > { %v2008_v39 = vpop.f32.mrf.mxu0 }
 0x8bd   : > { %v2009_v40 = vadd.f32 %v2371_v38, %v2008_v39 }
 0x8be   : > { %v2487_v41 = vpop.f32.mrf.mxu0 }
 0x8bf   : > { %v2014_v42 = vmul.f32 %v2009_v40, %v2009_v40 }
 0x8c0   : > { %v2011_v43 = vpop.f32.mrf.mxu0 }
 0x8c1   : > { %v2015_v45 = vmul.f32 %v2014_v42, %v2009_v40 }
 0x8c2   : > { %v2488_v46 = vpop.f32.mrf.mxu0 }
 0x8c3   : > { %v2016_v47 = vmul.f32 0.044715, %v2015_v45 }
 0x8c5   : > { %v2017_v48 = vadd.f32 %v2016_v47, %v2009_v40 }
 0x8c7   : > { %v2018_v49 = vmul.f32 0.7978846, %v2017_v48 }
 0x8c9   : > { %2640 = vtanh.f32 %v2018_v49 }
 0x8d6   : > { %v2641_v6 = vpop.eup %2640 }
 0x8d7   : > { %v2020_v51 = vadd.f32 1.0, %v2641_v6 }
 0x8d9   : > { %v2021_v52 = vmul.f32 0.5, %v2020_v51 }
 0x8db   : > { %v2022_v55 = vmul.f32 %v2021_v52, %v2009_v40 }
 0x8dd   : > { %v2023_v30 = vpack.c.bf16 %v2022_v55, %v2022_v55 }
 0x8df   : > { %2498 = vmatmul.mubr.msk.bf16.vlgmr.msra.gmra.mxu1 %vm2063_vm6, %v2023_v30 }
 0x99f   : > { %v2101_v56 = vpop.f32.mrf.mxu1 }
 0x9a0   : > { %v2102_v57 = vadd.f32 %v2375_v25, %v2101_v56 }
 0x9a1   : > { %v2499_v58 = vpop.f32.mrf.mxu1 }
 0x9a2   : > { %v2107_v59 = vadd.f32 %v2102_v57, %v1946_v29 }
 0x9a3   : > { %v2104_v60 = vpop.f32.mrf.mxu1 }
 0x9a4   : > { %v2110_v53 = vsel %vm710_vm0, %v2107_v59, 0.0  ;;  %v2114_v54 = vmul.f32 %v2107_v59, %v2107_v59 }
 0x9a5   : > { %2111 = vadd.xlane.f32.xlu0 %v2110_v53  ;;  %v2500_v63 = vpop.f32.mrf.mxu1 }
 0x9a6   : > { %v2115_v44 = vsel %vm710_vm0, %v2114_v54, 0.0 }
 0x9a9   : > { %2116 = vadd.xlane.f32.xlu0 %v2115_v44 }
 0xa2e   : > { %v2112_v31 = vpop.xlane.xlu0 %2111 }
 0xa2f   : > { %v2113_v32 = vmul.f32 0.03125, %v2112_v31 }
 0xa31   : > { %v2119_v1 = vmul.f32 %v2113_v32, %v2113_v32  ;;  %v2121_v4 = vsub.f32 %v2107_v59, %v2113_v32 }
 0xa32   : > { %v2117_v0 = vpop.xlane.xlu0 %2116 }
 0xa33   : > { %v2118_v2 = vmul.f32 0.03125, %v2117_v0 }
 0xa35   : > { %v2120_v3 = vsub.f32 %v2118_v2, %v2119_v1 }
 0xa37   : > { %v2122_v50 = vadd.f32 1e-05, %v2120_v3 }
 0xa39   : > { %2642 = vrsqrt.f32 %v2122_v50 }
 0xa46   : > { %v2643_v5 = vpop.eup %2642 }
 0xa47   : > { %v2124_v8 = vmul.f32 %v2643_v5, %v2121_v4 }
 0xa49   : > { %v2131_v10 = vmul.f32 %v2381_v7, %v2124_v8 }
 0xa4b   : > { %v2138_v61 = vadd.f32 %v2382_v9, %v2131_v10 }
 0xa4d   : > { %v2140_v11 = vsel %vm710_vm0, %v2138_v61, 0.0  ;;  %2139 = vst.msk [vmem:[%s693_s24] sm:$0xff] %vm710_vm0, %v2138_v61 }
 0xa4e   : > { %v2141_v62 = vrot.slane %v2140_v11, 4 }
 0xa50   : > { %v2142_v12 = vadd.f32 %v2141_v62, %v2140_v11 }
 0xa52   : > { %v2143_v13 = vrot.slane %v2142_v12, 2 }
 0xa54   : > { %v2144_v14 = vadd.f32 %v2143_v13, %v2142_v12 }
 0xa56   : > { %v2145_v21 = vrot.slane %v2144_v14, 1 }
 0xa58   : > { %v2146_v15 = vadd.f32 %v2145_v21, %v2144_v14 }
 0xa5a   : > { %v2148_v17 = vmul.f32 0.125, %v2146_v15 }
 0xa5c   : > { %v2150_v18 = vmul.f32 %v2149_v16, %v2148_v17 }
 0xa5e   : > { %v2152_v19 = vsel %vm2151_vm7, %v2150_v18, 0.0 }
 0xa5f   : > { %2153 = vadd.xlane.f32.xlu1 %v2152_v19 }
 0xa60   : > { %2815 = shalt.err (!%p2812_p3)
}
 0xa61   : > { %s2816_s23 = scalar_lea.hbm %s2174_s5, 128  ;;  %s2820_s18 = scalar_lea.hbm %s3540_s3, 256 }
 0xa62   : > { %p2817_p9 = scmp.ne.s32.totalorder %s2174_s5, %s2816_s23  ;;  %p2821_p4 = scmp.lt.s32.totalorder %s2174_s5, %s3540_s3 }
 0xa63   : > { %p2822_p2 = scmp.lt.s32.totalorder %s2820_s18, %s2816_s23 }
 0xa64   : > { %p2818_p6 = pnand %p2817_p9, %p3541_p10 }
 0xa65   : > { %p2823_p5 = por %p2822_p2, %p2821_p4 }
 0xa66   : > { %p2819_p0 = pneg %p2818_p6 }
 0xa68   : > { %p2824_p8 = pnand %p2823_p5, %p2819_p0 }
 0xa6a   : > { %2827 = shalt.err (!%p2824_p8)
}
 0xa6b   : > { %2523 = dma.vmem_to_hbm [thread:$0]  (%p3541_p10), %s2177_s0, 128, %s2174_s5, %s2160_s2   ;;  %v2155_v20 = vld [vmem:[#allocation2] sm:$0x1]  ;;  %vm2157_vm8 = vcmask 0  }
 0xa6c   : > { %s3542_s28 = sld [smem:[#allocation33_spill]] }
 0xa72   : > { %s705_s19 = scalar_lea.vmem %s3542_s28, %s3182_s7 }
 0xae8   : > { %v2154_v22 = vpop.xlane.xlu1 %2153 }
 0xae9   : > { %v2156_v23 = vadd.f32 %v2155_v20, %v2154_v22 }
 0xaeb   : > { %2158 = vst.msk [vmem:[%s705_s19] sm:$0x1] %vm2157_vm8, %v2156_v23 }
 0xaec PF: > { %s3543_s8 = sld [smem:[#allocation24_spill]]  ;;  %s2191_s23 = sand.u32 1, %s2866_s20  }
 0xaed   : > { %s3544_s22 = sld [smem:[#allocation21_spill]]  ;;  %s2192_s25 = scalar_lea.sflag [#allocation5], %s2191_s23 }
 0xaf2   : > { %p3545_p11 = scmp.ne.s32.totalorder %s3543_s8, 0 }
 0xaf3   : > { %p3546_p1 = scmp.ge.s32.totalorder %s3544_s22, 2 }
 0xaf5   : > { %p2546_p7 = pnand %p3546_p1, %p3545_p11 }
 0xaf7   : > { %p2547_p13 = pneg %p2546_p7 }
 0xaf9   : > { %2861 = dma.done.wait (%p2547_p13), %s2192_s25, 128  }
 0xafa   : > { %2863 = vsyncadd (%p2547_p13), %s2192_s25, 4294967168  ;;  %s3547_s22 = sld [smem:[#allocation22_spill]]  ;;  %s3550_s20 = smov %s2870_s21 }
 0xafb   : > { %s3548_s0 = sld [smem:[#allocation20_spill]] }
 0xafc   : > { %s3549_s1 = sld [smem:[#allocation23_spill]] }
 0xb00   : > { %p38_p10 = scmp.ge.s32.totalorder %s3547_s22, 4  }
 0xb01   : > { %s3551_s21 = smov %s3548_s0 }
 0xb02   :  { %40 = sbr.rel (!%p38_p10) target bundleno = 18 (0x12), region = 172 }
 0xb07   :  { %2203 = vsyncpa [#allocation4], 1 }
 0xb08   :  { %2205 = vsyncpa [#allocation4 + $0x1], 1 }
 0xb09   :  { %2206 = vsyncpa [#allocation7], 1 }
 0xb0a   :  { %2207 = vsyncpa [#allocation10], 1 }
 0xb0b   :  { %2208 = vsyncpa [#allocation13], 1 }
 0xb0c   :  { %2209 = vsyncpa [#allocation5], 1 }
 0xb0d   :  { %2211 = vsyncpa [#allocation5 + $0x1], 1 }

</bundles_post_ra>
